<compile_context>
chip_gen: v6e
topology: v6e:2x2x1
jax: 0.10.0
libtpu: 0.0.40
codegen_flags: <defaults>
</compile_context>

<pallas_src>
import math

import jax
import jax.numpy as jnp
from jax import lax
from jax.experimental import pallas as pl
from jax.experimental.pallas import tpu as pltpu


# ----------------------------------------------------------------------------- helpers

def _layer_norm(x, gamma, beta, eps=1e-5):
    mean = jnp.mean(x, axis=-1, keepdims=True)
    var = jnp.mean((x - mean) ** 2, axis=-1, keepdims=True)
    return (x - mean) * lax.rsqrt(var + eps) * gamma + beta


# ----------------------------------------------------------------------------- kernel

def _make_kernel(Bc, S, E, H, FF):
    """Builds the fused kernel for a (Bc*S, E) resident activation."""
    hd = E // H
    Mc = Bc * S
    scale = 1.0 / math.sqrt(hd)
    bf16, f32 = jnp.bfloat16, jnp.float32

    def kernel(x_ref, mb_ref, wqkv_ref, wo_ref, vec_ref, w1_ref, b1_ref,
               w2t_ref, lnf_ref, out_ref, x_scr):
        l = pl.program_id(1)
        n_layers = pl.num_programs(1)

        # ---- first layer: load the (pre-concatenated) input into the VMEM scratch ----
        @pl.when(l == 0)
        def _():
            x_scr[...] = x_ref[0]

        x = x_scr[...]                                            # (Mc, E) f32

        # ---- packed per-layer vectors: [bqkv | bo | g1 | be1 | b2 | g2 | be2] ----
        vec = vec_ref[0]                                          # (7, 3E) f32
        bqkv = vec[0:1, :]                                        # (1, 3E)
        bo, g1, be1 = vec[1:2, :E], vec[2:3, :E], vec[3:4, :E]
        b2, g2, be2 = vec[4:5, :E], vec[5:6, :E], vec[6:7, :E]

        # ---- fused QKV projection: one lane-dense MXU pass ----
        qkv = jnp.dot(x.astype(bf16), wqkv_ref[0],
                      preferred_element_type=f32) + bqkv          # (Mc, 3E) f32
        q, k, v = qkv[:, :E], qkv[:, E:2 * E], qkv[:, 2 * E:]

        nb = mb_ref[0][:, None, :]                                # (Bc, 1, S) additive bias

        # ---- per-head attention (tiny batched matmuls), heads re-packed on the lane axis ----
        ctx_parts = []
        for h in range(H):
            sl = slice(h * hd, (h + 1) * hd)
            qh = q[:, sl].reshape(Bc, S, hd)
            kh = k[:, sl].reshape(Bc, S, hd)
            vh = v[:, sl].reshape(Bc, S, hd)
            s = jnp.einsum('bqd,bkd->bqk', qh, kh,
                           preferred_element_type=f32) * scale + nb
            m = jnp.max(s, axis=-1, keepdims=True)
            p = jnp.exp(s - m)
            a = p * pl.reciprocal(jnp.sum(p, axis=-1, keepdims=True), approx=True)
            ctx_h = jnp.einsum('bqk,bkd->bqd', a, vh,
                               preferred_element_type=f32)        # (Bc, S, hd)
            ctx_parts.append(ctx_h.reshape(Mc, hd))
        ctx = jnp.concatenate(ctx_parts, axis=-1)                 # (Mc, E)

        # ---- output projection + residual + post-LayerNorm 1 ----
        attn_out = jnp.dot(ctx.astype(bf16), wo_ref[0],
                           preferred_element_type=f32) + bo
        x1 = _layer_norm(x + attn_out, g1, be1)

        # ---- feed-forward (ReLU); bf16 MXU operands, f32 accumulation ----
        h1 = jnp.dot(x1.astype(bf16), w1_ref[0],
                     preferred_element_type=f32) + b1_ref[0]      # (Mc, FF)
        h1 = jnp.maximum(h1, 0.0)
        # w2 stored transposed (E, FF): contract FF with FF (lane-dense weight tile).
        ff = lax.dot_general(h1.astype(bf16), w2t_ref[0],
                             (((1,), (1,)), ((), ())),
                             preferred_element_type=f32) + b2     # (Mc, E)

        # ---- residual + post-LayerNorm 2 ----
        x2 = _layer_norm(x1 + ff, g2, be2)
        x_scr[...] = x2

        # ---- final nn.LayerNorm(E) after the last encoder layer ----
        @pl.when(l == n_layers - 1)
        def _():
            lnf = lnf_ref[...]                                    # (2, E)
            out_ref[0] = _layer_norm(x2, lnf[0:1, :], lnf[1:2, :])

    return kernel


# ----------------------------------------------------------------------------- params

def init_params(key, embed_dim, ff_dim, num_layers):
    """Deterministic synthetic parameters, stacked over layers (leading L axis)."""
    std = 0.02
    E, FF, L = embed_dim, ff_dim, num_layers
    key, *ks = jax.random.split(key, 7)
    return {
        "wq": jax.random.normal(ks[0], (L, E, E), jnp.float32) * std,
        "bq": jnp.zeros((L, 1, E), jnp.float32),
        "wk": jax.random.normal(ks[1], (L, E, E), jnp.float32) * std,
        "bk": jnp.zeros((L, 1, E), jnp.float32),
        "wv": jax.random.normal(ks[2], (L, E, E), jnp.float32) * std,
        "bv": jnp.zeros((L, 1, E), jnp.float32),
        "wo": jax.random.normal(ks[3], (L, E, E), jnp.float32) * std,
        "bo": jnp.zeros((L, 1, E), jnp.float32),
        "g1": jnp.ones((L, 1, E), jnp.float32),
        "be1": jnp.zeros((L, 1, E), jnp.float32),
        "w1": jax.random.normal(ks[4], (L, E, FF), jnp.float32) * std,
        "b1": jnp.zeros((L, 1, FF), jnp.float32),
        "w2": jax.random.normal(ks[5], (L, FF, E), jnp.float32) * std,
        "b2": jnp.zeros((L, 1, E), jnp.float32),
        "g2": jnp.ones((L, 1, E), jnp.float32),
        "be2": jnp.zeros((L, 1, E), jnp.float32),
        "ln_gamma": jnp.ones((1, E), jnp.float32),
        "ln_beta": jnp.zeros((1, E), jnp.float32),
    }


def prepare_params(params):
    """One-time weight preprocessing (hoisted out of the per-call path).

    Fuses QKV weights, transposes w2 to a lane-dense layout, casts matmul weights to
    bf16 and packs all tiny per-layer vectors into one (L, 7, 3E) f32 array.
    """
    bf16, f32 = jnp.bfloat16, jnp.float32
    E = params["wq"].shape[-1]
    E3 = 3 * E

    wqkv = jnp.concatenate([params["wq"], params["wk"], params["wv"]],
                           axis=-1).astype(bf16)                      # (L, E, 3E)
    bqkv = jnp.concatenate([params["bq"], params["bk"], params["bv"]],
                           axis=-1).astype(f32)                       # (L, 1, 3E)

    def pad3(v):  # (L, 1, E) -> (L, 1, 3E)
        return jnp.pad(v.astype(f32), ((0, 0), (0, 0), (0, E3 - v.shape[-1])))

    vec = jnp.concatenate([bqkv, pad3(params["bo"]), pad3(params["g1"]),
                           pad3(params["be1"]), pad3(params["b2"]),
                           pad3(params["g2"]), pad3(params["be2"])],
                          axis=1).astype(f32)                         # (L, 7, 3E)

    return {
        "wqkv": wqkv,
        "wo": params["wo"].astype(bf16),                              # (L, E, E)
        "vec": vec,
        "w1": params["w1"].astype(bf16),                              # (L, E, FF)
        "b1": params["b1"].astype(f32),                               # (L, 1, FF)
        "w2t": jnp.transpose(params["w2"], (0, 2, 1)).astype(bf16),   # (L, E, FF)
        "lnf": jnp.concatenate([params["ln_gamma"], params["ln_beta"]],
                               axis=0).astype(f32),                   # (2, E)
    }


# ----------------------------------------------------------------------------- wrapper

def long_term_temporal_module(lt_features, src_key_padding_mask, timestep_emb,
                              prep, num_heads, batch_chunks=1):
    """Forward pass matching LongTermTemporalModule.forward (eval mode).

    `prep` is the output of prepare_params().  `batch_chunks=2` keeps a 2-way
    "parallel" leading grid axis (use on v7x to engage both TensorCores).
    """
    f32 = jnp.float32
    B, S, FEAT = lt_features.shape
    T = timestep_emb.shape[-1]
    E = FEAT + T
    H = num_heads
    L = prep["wqkv"].shape[0]
    FF = prep["w1"].shape[-1]
    P = batch_chunks
    assert B % P == 0 and E % H == 0
    Bc = B // P
    Mc = Bc * S

    # concat(lt_features, timestep_emb over seq) + additive key-padding bias: once, in XLA.
    te = jnp.broadcast_to(timestep_emb.astype(f32)[:, None, :], (B, S, T))
    x = jnp.concatenate([lt_features.astype(f32), te], axis=-1)      # (B, S, E)
    x = x.reshape(P, Mc, E)
    mb = (src_key_padding_mask.astype(f32) * (-1e9)).reshape(P, Bc, S)

    kernel = _make_kernel(Bc, S, E, H, FF)

    out = pl.pallas_call(
        kernel,
        out_shape=jax.ShapeDtypeStruct((P, Mc, E), f32),
        grid=(P, L),
        in_specs=[
            pl.BlockSpec((1, Mc, E), lambda p, l: (p, 0, 0)),          # x (concat input)
            pl.BlockSpec((1, Bc, S), lambda p, l: (p, 0, 0)),          # key-padding bias
            pl.BlockSpec((1, E, 3 * E), lambda p, l: (l, 0, 0)),       # wqkv
            pl.BlockSpec((1, E, E), lambda p, l: (l, 0, 0)),           # wo
            pl.BlockSpec((1, 7, 3 * E), lambda p, l: (l, 0, 0)),       # packed vectors
            pl.BlockSpec((1, E, FF), lambda p, l: (l, 0, 0)),          # w1
            pl.BlockSpec((1, 1, FF), lambda p, l: (l, 0, 0)),          # b1
            pl.BlockSpec((1, E, FF), lambda p, l: (l, 0, 0)),          # w2 (transposed)
            pl.BlockSpec((2, E), lambda p, l: (0, 0)),                 # final LN gamma/beta
        ],
        out_specs=pl.BlockSpec((1, Mc, E), lambda p, l: (p, 0, 0)),
        scratch_shapes=[pltpu.VMEM((Mc, E), f32)],
        compiler_params=pltpu.CompilerParams(
            dimension_semantics=("parallel", "arbitrary")),
    )(x, mb, prep["wqkv"], prep["wo"], prep["vec"],
      prep["w1"], prep["b1"], prep["w2t"], prep["lnf"])

    return out.reshape(B, S, E)


# ----------------------------------------------------------------------------- main

if __name__ == "__main__":
    # Small shapes consistent with the module's forward:
    B, S = 2, 8                 # batch, sequence length
    FEAT, TIME = 24, 8          # lt_features dim + timestep embedding dim
    EMBED = FEAT + TIME         # d_model = 32 (what __init__ receives as embed_dim)
    NUM_HEADS = 4               # find_closest_divisible_num_heads(32, 4) -> 4
    NUM_LAYERS = 2
    FF_DIM = 2048               # PyTorch TransformerEncoderLayer default dim_feedforward

    key = jax.random.PRNGKey(0)
    k_feat, k_time, k_par = jax.random.split(key, 3)

    lt_features = jax.random.normal(k_feat, (B, S, FEAT), jnp.float32)
    timestep_emb = jax.random.normal(k_time, (B, TIME), jnp.float32)
    # True == padded position (last two timesteps padded; every row keeps valid keys)
    src_key_padding_mask = jnp.zeros((B, S), dtype=bool).at[:, S - 2:].set(True)

    params = init_params(k_par, EMBED, FF_DIM, NUM_LAYERS)
    prep = prepare_params(params)            # one-time weight preprocessing
    jax.block_until_ready(prep)

    out = long_term_temporal_module(lt_features, src_key_padding_mask,
                                    timestep_emb, prep, NUM_HEADS,
                                    batch_chunks=1)
    jax.block_until_ready(out)
    assert out.shape == (B, S, EMBED)
    assert bool(jnp.all(jnp.isfinite(out)))
    print("KERNEL_OK")
</pallas_src>

<mosaic_0001>
module attributes {stable_mosaic.version = 11 : i64} {
  func.func @kernel(%arg0: i32, %arg1: i32, %arg2: memref<1x16x32xf32, #tpu.memory_space<vmem>>, %arg3: memref<1x2x8xf32, #tpu.memory_space<vmem>>, %arg4: memref<1x32x96xbf16, #tpu.memory_space<vmem>>, %arg5: memref<1x32x32xbf16, #tpu.memory_space<vmem>>, %arg6: memref<1x7x96xf32, #tpu.memory_space<vmem>>, %arg7: memref<1x32x2048xbf16, #tpu.memory_space<vmem>>, %arg8: memref<1x1x2048xf32, #tpu.memory_space<vmem>>, %arg9: memref<1x32x2048xbf16, #tpu.memory_space<vmem>>, %arg10: memref<2x32xf32, #tpu.memory_space<vmem>>, %arg11: memref<1x16x32xf32, #tpu.memory_space<vmem>>, %arg12: memref<16x32xf32, #tpu.memory_space<vmem>>) attributes {dimension_semantics = [#tpu.dimension_semantics<parallel>, #tpu.dimension_semantics<arbitrary>], iteration_bounds = array<i64: 1, 2>, scalar_prefetch = 0 : i64, scratch_operands = 1 : i64, tpu.core_type = #tpu.core_type<tc>, window_params = [{transform_indices = @transform_0, window_bounds = array<i64: 1, 16, 32>}, {transform_indices = @transform_1, window_bounds = array<i64: 1, 2, 8>}, {transform_indices = @transform_2, window_bounds = array<i64: 1, 32, 96>}, {transform_indices = @transform_3, window_bounds = array<i64: 1, 32, 32>}, {transform_indices = @transform_4, window_bounds = array<i64: 1, 7, 96>}, {transform_indices = @transform_5, window_bounds = array<i64: 1, 32, 2048>}, {transform_indices = @transform_6, window_bounds = array<i64: 1, 1, 2048>}, {transform_indices = @transform_7, window_bounds = array<i64: 1, 32, 2048>}, {pipeline_mode = #tpu.pipeline_mode<synchronous>, transform_indices = @transform_8, window_bounds = array<i64: 2, 32>}, {transform_indices = @transform_9, window_bounds = array<i64: 1, 16, 32>}]} {
    %c0_i32 = arith.constant 0 : i32
    %0 = arith.cmpi eq, %arg1, %c0_i32 : i32
    %1 = arith.extui %0 : i1 to i32
    %c0_i32_0 = arith.constant 0 : i32
    %2 = arith.cmpi ne, %1, %c0_i32_0 : i32
    scf.if %2 {
      %c0_60 = arith.constant 0 : index
      %c0_61 = arith.constant 0 : index
      %c0_62 = arith.constant 0 : index
      %190 = vector.load %arg2[%c0_60, %c0_61, %c0_62] : memref<1x16x32xf32, #tpu.memory_space<vmem>>, vector<1x16x32xf32>
      %191 = vector.shape_cast %190 : vector<1x16x32xf32> to vector<16x32xf32>
      %c0_63 = arith.constant 0 : index
      %c0_64 = arith.constant 0 : index
      %192 = vector.load %arg12[%c0_63, %c0_64] : memref<16x32xf32, #tpu.memory_space<vmem>>, vector<16x32xf32>
      tpu.vector_store %arg12[%c0_63, %c0_64], %191 {strides = array<i32>} : memref<16x32xf32, #tpu.memory_space<vmem>>, vector<16x32xf32>,
    } else {
    }
    %c0 = arith.constant 0 : index
    %c0_1 = arith.constant 0 : index
    %3 = vector.load %arg12[%c0, %c0_1] : memref<16x32xf32, #tpu.memory_space<vmem>>, vector<16x32xf32>
    %c0_2 = arith.constant 0 : index
    %c0_3 = arith.constant 0 : index
    %c0_4 = arith.constant 0 : index
    %4 = vector.load %arg6[%c0_2, %c0_3, %c0_4] : memref<1x7x96xf32, #tpu.memory_space<vmem>>, vector<1x7x96xf32>
    %5 = vector.shape_cast %4 : vector<1x7x96xf32> to vector<7x96xf32>
    %6 = vector.extract_strided_slice %5 {offsets = [0, 0], sizes = [1, 96], strides = [1, 1]} : vector<7x96xf32> to vector<1x96xf32>
    %7 = vector.extract_strided_slice %5 {offsets = [1, 0], sizes = [1, 32], strides = [1, 1]} : vector<7x96xf32> to vector<1x32xf32>
    %8 = vector.extract_strided_slice %5 {offsets = [2, 0], sizes = [1, 32], strides = [1, 1]} : vector<7x96xf32> to vector<1x32xf32>
    %9 = vector.extract_strided_slice %5 {offsets = [3, 0], sizes = [1, 32], strides = [1, 1]} : vector<7x96xf32> to vector<1x32xf32>
    %10 = vector.extract_strided_slice %5 {offsets = [4, 0], sizes = [1, 32], strides = [1, 1]} : vector<7x96xf32> to vector<1x32xf32>
    %11 = vector.extract_strided_slice %5 {offsets = [5, 0], sizes = [1, 32], strides = [1, 1]} : vector<7x96xf32> to vector<1x32xf32>
    %12 = vector.extract_strided_slice %5 {offsets = [6, 0], sizes = [1, 32], strides = [1, 1]} : vector<7x96xf32> to vector<1x32xf32>
    %13 = arith.truncf %3 : vector<16x32xf32> to vector<16x32xbf16>
    %c0_5 = arith.constant 0 : index
    %c0_6 = arith.constant 0 : index
    %c0_7 = arith.constant 0 : index
    %14 = vector.load %arg4[%c0_5, %c0_6, %c0_7] : memref<1x32x96xbf16, #tpu.memory_space<vmem>>, vector<1x32x96xbf16>
    %15 = vector.shape_cast %14 : vector<1x32x96xbf16> to vector<32x96xbf16>
    %cst = arith.constant dense<0.000000e+00> : vector<16x96xf32>
    %16 = tpu.matmul %13, %15, %cst {dimension_numbers = #tpu.dot_dimension_numbers<[1], [0], [0], [1], [0, 0, 1, 1], [], []>} : vector<16x32xbf16>, vector<32x96xbf16>, vector<16x96xf32> -> vector<16x96xf32>
    %17 = vector.broadcast %6 : vector<1x96xf32> to vector<16x96xf32>
    %18 = arith.addf %16, %17 : vector<16x96xf32>
    %19 = vector.extract_strided_slice %18 {offsets = [0, 0], sizes = [16, 32], strides = [1, 1]} : vector<16x96xf32> to vector<16x32xf32>
    %20 = vector.extract_strided_slice %18 {offsets = [0, 32], sizes = [16, 32], strides = [1, 1]} : vector<16x96xf32> to vector<16x32xf32>
    %21 = vector.extract_strided_slice %18 {offsets = [0, 64], sizes = [16, 32], strides = [1, 1]} : vector<16x96xf32> to vector<16x32xf32>
    %c0_8 = arith.constant 0 : index
    %c0_9 = arith.constant 0 : index
    %c0_10 = arith.constant 0 : index
    %22 = vector.load %arg3[%c0_8, %c0_9, %c0_10] : memref<1x2x8xf32, #tpu.memory_space<vmem>>, vector<1x2x8xf32>
    %23 = vector.shape_cast %22 : vector<1x2x8xf32> to vector<2x8xf32>
    %24 = vector.shape_cast %23 : vector<2x8xf32> to vector<2x1x8xf32>
    %25 = vector.extract_strided_slice %19 {offsets = [0, 0], sizes = [16, 8], strides = [1, 1]} : vector<16x32xf32> to vector<16x8xf32>
    %26 = vector.shape_cast %25 : vector<16x8xf32> to vector<2x8x8xf32>
    %27 = vector.extract_strided_slice %20 {offsets = [0, 0], sizes = [16, 8], strides = [1, 1]} : vector<16x32xf32> to vector<16x8xf32>
    %28 = vector.shape_cast %27 : vector<16x8xf32> to vector<2x8x8xf32>
    %29 = vector.extract_strided_slice %21 {offsets = [0, 0], sizes = [16, 8], strides = [1, 1]} : vector<16x32xf32> to vector<16x8xf32>
    %30 = vector.shape_cast %29 : vector<16x8xf32> to vector<2x8x8xf32>
    "tpu.trace_start"() <{level = 10 : i32, message = "bqd,bkd->bqk"}> : () -> ()
    %cst_11 = arith.constant dense<0.000000e+00> : vector<2x8x8xf32>
    %31 = tpu.matmul %26, %28, %cst_11 {dimension_numbers = #tpu.dot_dimension_numbers<[2], [2], [1], [1], [0, 0, 0, 1, 1, 1], [0], [0]>} : vector<2x8x8xf32>, vector<2x8x8xf32>, vector<2x8x8xf32> -> vector<2x8x8xf32>
    "tpu.trace_stop"() : () -> ()
    %cst_12 = arith.constant 0.353553385 : f32
    %32 = vector.broadcast %cst_12 : f32 to vector<2x8x8xf32>
    %33 = arith.mulf %31, %32 : vector<2x8x8xf32>
    %34 = vector.broadcast %24 : vector<2x1x8xf32> to vector<2x8x8xf32>
    %35 = arith.addf %33, %34 : vector<2x8x8xf32>
    %cst_13 = arith.constant dense<0xFF800000> : vector<2x8xf32>
    %36 = vector.multi_reduction <maximumf>, %35, %cst_13 [2] : vector<2x8x8xf32> to vector<2x8xf32>
    %37 = vector.shape_cast %36 : vector<2x8xf32> to vector<2x8x1xf32>
    %38 = vector.broadcast %37 : vector<2x8x1xf32> to vector<2x8x8xf32>
    %39 = arith.subf %35, %38 : vector<2x8x8xf32>
    %40 = math.exp %39 : vector<2x8x8xf32>
    %cst_14 = arith.constant dense<0.000000e+00> : vector<2x8xf32>
    %41 = vector.multi_reduction <add>, %40, %cst_14 [2] : vector<2x8x8xf32> to vector<2x8xf32>
    %42 = vector.shape_cast %41 : vector<2x8xf32> to vector<2x8x1xf32>
    %43 = tpu.reciprocal %42 {approx = true} : vector<2x8x1xf32> -> vector<2x8x1xf32>
    %44 = vector.broadcast %43 : vector<2x8x1xf32> to vector<2x8x8xf32>
    %45 = arith.mulf %40, %44 : vector<2x8x8xf32>
    "tpu.trace_start"() <{level = 10 : i32, message = "bqk,bkd->bqd"}> : () -> ()
    %cst_15 = arith.constant dense<0.000000e+00> : vector<2x8x8xf32>
    %46 = tpu.matmul %45, %30, %cst_15 {dimension_numbers = #tpu.dot_dimension_numbers<[2], [1], [1], [2], [0, 0, 0, 1, 1, 2], [0], [0]>} : vector<2x8x8xf32>, vector<2x8x8xf32>, vector<2x8x8xf32> -> vector<2x8x8xf32>
    "tpu.trace_stop"() : () -> ()
    %47 = vector.shape_cast %46 : vector<2x8x8xf32> to vector<16x8xf32>
    %48 = vector.extract_strided_slice %19 {offsets = [0, 8], sizes = [16, 8], strides = [1, 1]} : vector<16x32xf32> to vector<16x8xf32>
    %49 = vector.shape_cast %48 : vector<16x8xf32> to vector<2x8x8xf32>
    %50 = vector.extract_strided_slice %20 {offsets = [0, 8], sizes = [16, 8], strides = [1, 1]} : vector<16x32xf32> to vector<16x8xf32>
    %51 = vector.shape_cast %50 : vector<16x8xf32> to vector<2x8x8xf32>
    %52 = vector.extract_strided_slice %21 {offsets = [0, 8], sizes = [16, 8], strides = [1, 1]} : vector<16x32xf32> to vector<16x8xf32>
    %53 = vector.shape_cast %52 : vector<16x8xf32> to vector<2x8x8xf32>
    "tpu.trace_start"() <{level = 10 : i32, message = "bqd,bkd->bqk"}> : () -> ()
    %cst_16 = arith.constant dense<0.000000e+00> : vector<2x8x8xf32>
    %54 = tpu.matmul %49, %51, %cst_16 {dimension_numbers = #tpu.dot_dimension_numbers<[2], [2], [1], [1], [0, 0, 0, 1, 1, 1], [0], [0]>} : vector<2x8x8xf32>, vector<2x8x8xf32>, vector<2x8x8xf32> -> vector<2x8x8xf32>
    "tpu.trace_stop"() : () -> ()
    %cst_17 = arith.constant 0.353553385 : f32
    %55 = vector.broadcast %cst_17 : f32 to vector<2x8x8xf32>
    %56 = arith.mulf %54, %55 : vector<2x8x8xf32>
    %57 = vector.broadcast %24 : vector<2x1x8xf32> to vector<2x8x8xf32>
    %58 = arith.addf %56, %57 : vector<2x8x8xf32>
    %cst_18 = arith.constant dense<0xFF800000> : vector<2x8xf32>
    %59 = vector.multi_reduction <maximumf>, %58, %cst_18 [2] : vector<2x8x8xf32> to vector<2x8xf32>
    %60 = vector.shape_cast %59 : vector<2x8xf32> to vector<2x8x1xf32>
    %61 = vector.broadcast %60 : vector<2x8x1xf32> to vector<2x8x8xf32>
    %62 = arith.subf %58, %61 : vector<2x8x8xf32>
    %63 = math.exp %62 : vector<2x8x8xf32>
    %cst_19 = arith.constant dense<0.000000e+00> : vector<2x8xf32>
    %64 = vector.multi_reduction <add>, %63, %cst_19 [2] : vector<2x8x8xf32> to vector<2x8xf32>
    %65 = vector.shape_cast %64 : vector<2x8xf32> to vector<2x8x1xf32>
    %66 = tpu.reciprocal %65 {approx = true} : vector<2x8x1xf32> -> vector<2x8x1xf32>
    %67 = vector.broadcast %66 : vector<2x8x1xf32> to vector<2x8x8xf32>
    %68 = arith.mulf %63, %67 : vector<2x8x8xf32>
    "tpu.trace_start"() <{level = 10 : i32, message = "bqk,bkd->bqd"}> : () -> ()
    %cst_20 = arith.constant dense<0.000000e+00> : vector<2x8x8xf32>
    %69 = tpu.matmul %68, %53, %cst_20 {dimension_numbers = #tpu.dot_dimension_numbers<[2], [1], [1], [2], [0, 0, 0, 1, 1, 2], [0], [0]>} : vector<2x8x8xf32>, vector<2x8x8xf32>, vector<2x8x8xf32> -> vector<2x8x8xf32>
    "tpu.trace_stop"() : () -> ()
    %70 = vector.shape_cast %69 : vector<2x8x8xf32> to vector<16x8xf32>
    %71 = vector.extract_strided_slice %19 {offsets = [0, 16], sizes = [16, 8], strides = [1, 1]} : vector<16x32xf32> to vector<16x8xf32>
    %72 = vector.shape_cast %71 : vector<16x8xf32> to vector<2x8x8xf32>
    %73 = vector.extract_strided_slice %20 {offsets = [0, 16], sizes = [16, 8], strides = [1, 1]} : vector<16x32xf32> to vector<16x8xf32>
    %74 = vector.shape_cast %73 : vector<16x8xf32> to vector<2x8x8xf32>
    %75 = vector.extract_strided_slice %21 {offsets = [0, 16], sizes = [16, 8], strides = [1, 1]} : vector<16x32xf32> to vector<16x8xf32>
    %76 = vector.shape_cast %75 : vector<16x8xf32> to vector<2x8x8xf32>
    "tpu.trace_start"() <{level = 10 : i32, message = "bqd,bkd->bqk"}> : () -> ()
    %cst_21 = arith.constant dense<0.000000e+00> : vector<2x8x8xf32>
    %77 = tpu.matmul %72, %74, %cst_21 {dimension_numbers = #tpu.dot_dimension_numbers<[2], [2], [1], [1], [0, 0, 0, 1, 1, 1], [0], [0]>} : vector<2x8x8xf32>, vector<2x8x8xf32>, vector<2x8x8xf32> -> vector<2x8x8xf32>
    "tpu.trace_stop"() : () -> ()
    %cst_22 = arith.constant 0.353553385 : f32
    %78 = vector.broadcast %cst_22 : f32 to vector<2x8x8xf32>
    %79 = arith.mulf %77, %78 : vector<2x8x8xf32>
    %80 = vector.broadcast %24 : vector<2x1x8xf32> to vector<2x8x8xf32>
    %81 = arith.addf %79, %80 : vector<2x8x8xf32>
    %cst_23 = arith.constant dense<0xFF800000> : vector<2x8xf32>
    %82 = vector.multi_reduction <maximumf>, %81, %cst_23 [2] : vector<2x8x8xf32> to vector<2x8xf32>
    %83 = vector.shape_cast %82 : vector<2x8xf32> to vector<2x8x1xf32>
    %84 = vector.broadcast %83 : vector<2x8x1xf32> to vector<2x8x8xf32>
    %85 = arith.subf %81, %84 : vector<2x8x8xf32>
    %86 = math.exp %85 : vector<2x8x8xf32>
    %cst_24 = arith.constant dense<0.000000e+00> : vector<2x8xf32>
    %87 = vector.multi_reduction <add>, %86, %cst_24 [2] : vector<2x8x8xf32> to vector<2x8xf32>
    %88 = vector.shape_cast %87 : vector<2x8xf32> to vector<2x8x1xf32>
    %89 = tpu.reciprocal %88 {approx = true} : vector<2x8x1xf32> -> vector<2x8x1xf32>
    %90 = vector.broadcast %89 : vector<2x8x1xf32> to vector<2x8x8xf32>
    %91 = arith.mulf %86, %90 : vector<2x8x8xf32>
    "tpu.trace_start"() <{level = 10 : i32, message = "bqk,bkd->bqd"}> : () -> ()
    %cst_25 = arith.constant dense<0.000000e+00> : vector<2x8x8xf32>
    %92 = tpu.matmul %91, %76, %cst_25 {dimension_numbers = #tpu.dot_dimension_numbers<[2], [1], [1], [2], [0, 0, 0, 1, 1, 2], [0], [0]>} : vector<2x8x8xf32>, vector<2x8x8xf32>, vector<2x8x8xf32> -> vector<2x8x8xf32>
    "tpu.trace_stop"() : () -> ()
    %93 = vector.shape_cast %92 : vector<2x8x8xf32> to vector<16x8xf32>
    %94 = vector.extract_strided_slice %19 {offsets = [0, 24], sizes = [16, 8], strides = [1, 1]} : vector<16x32xf32> to vector<16x8xf32>
    %95 = vector.shape_cast %94 : vector<16x8xf32> to vector<2x8x8xf32>
    %96 = vector.extract_strided_slice %20 {offsets = [0, 24], sizes = [16, 8], strides = [1, 1]} : vector<16x32xf32> to vector<16x8xf32>
    %97 = vector.shape_cast %96 : vector<16x8xf32> to vector<2x8x8xf32>
    %98 = vector.extract_strided_slice %21 {offsets = [0, 24], sizes = [16, 8], strides = [1, 1]} : vector<16x32xf32> to vector<16x8xf32>
    %99 = vector.shape_cast %98 : vector<16x8xf32> to vector<2x8x8xf32>
    "tpu.trace_start"() <{level = 10 : i32, message = "bqd,bkd->bqk"}> : () -> ()
    %cst_26 = arith.constant dense<0.000000e+00> : vector<2x8x8xf32>
    %100 = tpu.matmul %95, %97, %cst_26 {dimension_numbers = #tpu.dot_dimension_numbers<[2], [2], [1], [1], [0, 0, 0, 1, 1, 1], [0], [0]>} : vector<2x8x8xf32>, vector<2x8x8xf32>, vector<2x8x8xf32> -> vector<2x8x8xf32>
    "tpu.trace_stop"() : () -> ()
    %cst_27 = arith.constant 0.353553385 : f32
    %101 = vector.broadcast %cst_27 : f32 to vector<2x8x8xf32>
    %102 = arith.mulf %100, %101 : vector<2x8x8xf32>
    %103 = vector.broadcast %24 : vector<2x1x8xf32> to vector<2x8x8xf32>
    %104 = arith.addf %102, %103 : vector<2x8x8xf32>
    %cst_28 = arith.constant dense<0xFF800000> : vector<2x8xf32>
    %105 = vector.multi_reduction <maximumf>, %104, %cst_28 [2] : vector<2x8x8xf32> to vector<2x8xf32>
    %106 = vector.shape_cast %105 : vector<2x8xf32> to vector<2x8x1xf32>
    %107 = vector.broadcast %106 : vector<2x8x1xf32> to vector<2x8x8xf32>
    %108 = arith.subf %104, %107 : vector<2x8x8xf32>
    %109 = math.exp %108 : vector<2x8x8xf32>
    %cst_29 = arith.constant dense<0.000000e+00> : vector<2x8xf32>
    %110 = vector.multi_reduction <add>, %109, %cst_29 [2] : vector<2x8x8xf32> to vector<2x8xf32>
    %111 = vector.shape_cast %110 : vector<2x8xf32> to vector<2x8x1xf32>
    %112 = tpu.reciprocal %111 {approx = true} : vector<2x8x1xf32> -> vector<2x8x1xf32>
    %113 = vector.broadcast %112 : vector<2x8x1xf32> to vector<2x8x8xf32>
    %114 = arith.mulf %109, %113 : vector<2x8x8xf32>
    "tpu.trace_start"() <{level = 10 : i32, message = "bqk,bkd->bqd"}> : () -> ()
    %cst_30 = arith.constant dense<0.000000e+00> : vector<2x8x8xf32>
    %115 = tpu.matmul %114, %99, %cst_30 {dimension_numbers = #tpu.dot_dimension_numbers<[2], [1], [1], [2], [0, 0, 0, 1, 1, 2], [0], [0]>} : vector<2x8x8xf32>, vector<2x8x8xf32>, vector<2x8x8xf32> -> vector<2x8x8xf32>
    "tpu.trace_stop"() : () -> ()
    %116 = vector.shape_cast %115 : vector<2x8x8xf32> to vector<16x8xf32>
    %117 = tpu.concatenate %47, %70, %93, %116 in 1 : vector<16x8xf32>, vector<16x8xf32>, vector<16x8xf32>, vector<16x8xf32> -> vector<16x32xf32>
    %118 = arith.truncf %117 : vector<16x32xf32> to vector<16x32xbf16>
    %c0_31 = arith.constant 0 : index
    %c0_32 = arith.constant 0 : index
    %c0_33 = arith.constant 0 : index
    %119 = vector.load %arg5[%c0_31, %c0_32, %c0_33] : memref<1x32x32xbf16, #tpu.memory_space<vmem>>, vector<1x32x32xbf16>
    %120 = vector.shape_cast %119 : vector<1x32x32xbf16> to vector<32x32xbf16>
    %cst_34 = arith.constant dense<0.000000e+00> : vector<16x32xf32>
    %121 = tpu.matmul %118, %120, %cst_34 {dimension_numbers = #tpu.dot_dimension_numbers<[1], [0], [0], [1], [0, 0, 1, 1], [], []>} : vector<16x32xbf16>, vector<32x32xbf16>, vector<16x32xf32> -> vector<16x32xf32>
    %122 = vector.broadcast %7 : vector<1x32xf32> to vector<16x32xf32>
    %123 = arith.addf %121, %122 : vector<16x32xf32>
    %124 = arith.addf %3, %123 : vector<16x32xf32>
    %cst_35 = arith.constant dense<0.000000e+00> : vector<16xf32>
    %125 = vector.multi_reduction <add>, %124, %cst_35 [1] : vector<16x32xf32> to vector<16xf32>
    %126 = vector.shape_cast %125 : vector<16xf32> to vector<16x1xf32>
    %cst_36 = arith.constant 3.200000e+01 : f32
    %127 = vector.broadcast %cst_36 : f32 to vector<16x1xf32>
    %128 = arith.divf %126, %127 : vector<16x1xf32>
    %129 = vector.broadcast %128 : vector<16x1xf32> to vector<16x32xf32>
    %130 = arith.subf %124, %129 : vector<16x32xf32>
    %131 = arith.mulf %130, %130 : vector<16x32xf32>
    %cst_37 = arith.constant dense<0.000000e+00> : vector<16xf32>
    %132 = vector.multi_reduction <add>, %131, %cst_37 [1] : vector<16x32xf32> to vector<16xf32>
    %133 = vector.shape_cast %132 : vector<16xf32> to vector<16x1xf32>
    %cst_38 = arith.constant 3.200000e+01 : f32
    %134 = vector.broadcast %cst_38 : f32 to vector<16x1xf32>
    %135 = arith.divf %133, %134 : vector<16x1xf32>
    %136 = vector.broadcast %128 : vector<16x1xf32> to vector<16x32xf32>
    %137 = arith.subf %124, %136 : vector<16x32xf32>
    %cst_39 = arith.constant 9.99999974E-6 : f32
    %138 = vector.broadcast %cst_39 : f32 to vector<16x1xf32>
    %139 = arith.addf %135, %138 : vector<16x1xf32>
    %140 = math.rsqrt %139 : vector<16x1xf32>
    %141 = vector.broadcast %140 : vector<16x1xf32> to vector<16x32xf32>
    %142 = arith.mulf %137, %141 : vector<16x32xf32>
    %143 = vector.broadcast %8 : vector<1x32xf32> to vector<16x32xf32>
    %144 = arith.mulf %142, %143 : vector<16x32xf32>
    %145 = vector.broadcast %9 : vector<1x32xf32> to vector<16x32xf32>
    %146 = arith.addf %144, %145 : vector<16x32xf32>
    %147 = arith.truncf %146 : vector<16x32xf32> to vector<16x32xbf16>
    %c0_40 = arith.constant 0 : index
    %c0_41 = arith.constant 0 : index
    %c0_42 = arith.constant 0 : index
    %148 = vector.load %arg7[%c0_40, %c0_41, %c0_42] : memref<1x32x2048xbf16, #tpu.memory_space<vmem>>, vector<1x32x2048xbf16>
    %149 = vector.shape_cast %148 : vector<1x32x2048xbf16> to vector<32x2048xbf16>
    %cst_43 = arith.constant dense<0.000000e+00> : vector<16x2048xf32>
    %150 = tpu.matmul %147, %149, %cst_43 {dimension_numbers = #tpu.dot_dimension_numbers<[1], [0], [0], [1], [0, 0, 1, 1], [], []>} : vector<16x32xbf16>, vector<32x2048xbf16>, vector<16x2048xf32> -> vector<16x2048xf32>
    %c0_44 = arith.constant 0 : index
    %c0_45 = arith.constant 0 : index
    %c0_46 = arith.constant 0 : index
    %151 = vector.load %arg8[%c0_44, %c0_45, %c0_46] : memref<1x1x2048xf32, #tpu.memory_space<vmem>>, vector<1x1x2048xf32>
    %152 = vector.shape_cast %151 : vector<1x1x2048xf32> to vector<1x2048xf32>
    %153 = vector.broadcast %152 : vector<1x2048xf32> to vector<16x2048xf32>
    %154 = arith.addf %150, %153 : vector<16x2048xf32>
    %cst_47 = arith.constant 0.000000e+00 : f32
    %155 = vector.broadcast %cst_47 : f32 to vector<16x2048xf32>
    %156 = arith.maximumf %154, %155 : vector<16x2048xf32>
    %157 = arith.truncf %156 : vector<16x2048xf32> to vector<16x2048xbf16>
    %c0_48 = arith.constant 0 : index
    %c0_49 = arith.constant 0 : index
    %c0_50 = arith.constant 0 : index
    %158 = vector.load %arg9[%c0_48, %c0_49, %c0_50] : memref<1x32x2048xbf16, #tpu.memory_space<vmem>>, vector<1x32x2048xbf16>
    %159 = vector.shape_cast %158 : vector<1x32x2048xbf16> to vector<32x2048xbf16>
    %cst_51 = arith.constant dense<0.000000e+00> : vector<16x32xf32>
    %160 = tpu.matmul %157, %159, %cst_51 {dimension_numbers = #tpu.dot_dimension_numbers<[1], [1], [0], [0], [0, 0, 1, 0], [], []>} : vector<16x2048xbf16>, vector<32x2048xbf16>, vector<16x32xf32> -> vector<16x32xf32>
    %161 = vector.broadcast %10 : vector<1x32xf32> to vector<16x32xf32>
    %162 = arith.addf %160, %161 : vector<16x32xf32>
    %163 = arith.addf %146, %162 : vector<16x32xf32>
    %cst_52 = arith.constant dense<0.000000e+00> : vector<16xf32>
    %164 = vector.multi_reduction <add>, %163, %cst_52 [1] : vector<16x32xf32> to vector<16xf32>
    %165 = vector.shape_cast %164 : vector<16xf32> to vector<16x1xf32>
    %cst_53 = arith.constant 3.200000e+01 : f32
    %166 = vector.broadcast %cst_53 : f32 to vector<16x1xf32>
    %167 = arith.divf %165, %166 : vector<16x1xf32>
    %168 = vector.broadcast %167 : vector<16x1xf32> to vector<16x32xf32>
    %169 = arith.subf %163, %168 : vector<16x32xf32>
    %170 = arith.mulf %169, %169 : vector<16x32xf32>
    %cst_54 = arith.constant dense<0.000000e+00> : vector<16xf32>
    %171 = vector.multi_reduction <add>, %170, %cst_54 [1] : vector<16x32xf32> to vector<16xf32>
    %172 = vector.shape_cast %171 : vector<16xf32> to vector<16x1xf32>
    %cst_55 = arith.constant 3.200000e+01 : f32
    %173 = vector.broadcast %cst_55 : f32 to vector<16x1xf32>
    %174 = arith.divf %172, %173 : vector<16x1xf32>
    %175 = vector.broadcast %167 : vector<16x1xf32> to vector<16x32xf32>
    %176 = arith.subf %163, %175 : vector<16x32xf32>
    %cst_56 = arith.constant 9.99999974E-6 : f32
    %177 = vector.broadcast %cst_56 : f32 to vector<16x1xf32>
    %178 = arith.addf %174, %177 : vector<16x1xf32>
    %179 = math.rsqrt %178 : vector<16x1xf32>
    %180 = vector.broadcast %179 : vector<16x1xf32> to vector<16x32xf32>
    %181 = arith.mulf %176, %180 : vector<16x32xf32>
    %182 = vector.broadcast %11 : vector<1x32xf32> to vector<16x32xf32>
    %183 = arith.mulf %181, %182 : vector<16x32xf32>
    %184 = vector.broadcast %12 : vector<1x32xf32> to vector<16x32xf32>
    %185 = arith.addf %183, %184 : vector<16x32xf32>
    %c0_57 = arith.constant 0 : index
    %c0_58 = arith.constant 0 : index
    %186 = vector.load %arg12[%c0_57, %c0_58] : memref<16x32xf32, #tpu.memory_space<vmem>>, vector<16x32xf32>
    tpu.vector_store %arg12[%c0_57, %c0_58], %185 {strides = array<i32>} : memref<16x32xf32, #tpu.memory_space<vmem>>, vector<16x32xf32>,
    %c1_i32 = arith.constant 1 : i32
    %187 = arith.cmpi eq, %arg1, %c1_i32 : i32
    %188 = arith.extui %187 : i1 to i32
    %c0_i32_59 = arith.constant 0 : i32
    %189 = arith.cmpi ne, %188, %c0_i32_59 : i32
    scf.if %189 {
      %c0_60 = arith.constant 0 : index
      %c0_61 = arith.constant 0 : index
      %190 = vector.load %arg10[%c0_60, %c0_61] : memref<2x32xf32, #tpu.memory_space<vmem>>, vector<2x32xf32>
      %191 = vector.extract_strided_slice %190 {offsets = [0, 0], sizes = [1, 32], strides = [1, 1]} : vector<2x32xf32> to vector<1x32xf32>
      %192 = vector.extract_strided_slice %190 {offsets = [1, 0], sizes = [1, 32], strides = [1, 1]} : vector<2x32xf32> to vector<1x32xf32>
      %cst_62 = arith.constant dense<0.000000e+00> : vector<16xf32>
      %193 = vector.multi_reduction <add>, %185, %cst_62 [1] : vector<16x32xf32> to vector<16xf32>
      %194 = vector.shape_cast %193 : vector<16xf32> to vector<16x1xf32>
      %cst_63 = arith.constant 3.200000e+01 : f32
      %195 = vector.broadcast %cst_63 : f32 to vector<16x1xf32>
      %196 = arith.divf %194, %195 : vector<16x1xf32>
      %197 = vector.broadcast %196 : vector<16x1xf32> to vector<16x32xf32>
      %198 = arith.subf %185, %197 : vector<16x32xf32>
      %199 = arith.mulf %198, %198 : vector<16x32xf32>
      %cst_64 = arith.constant dense<0.000000e+00> : vector<16xf32>
      %200 = vector.multi_reduction <add>, %199, %cst_64 [1] : vector<16x32xf32> to vector<16xf32>
      %201 = vector.shape_cast %200 : vector<16xf32> to vector<16x1xf32>
      %cst_65 = arith.constant 3.200000e+01 : f32
      %202 = vector.broadcast %cst_65 : f32 to vector<16x1xf32>
      %203 = arith.divf %201, %202 : vector<16x1xf32>
      %204 = vector.broadcast %196 : vector<16x1xf32> to vector<16x32xf32>
      %205 = arith.subf %185, %204 : vector<16x32xf32>
      %cst_66 = arith.constant 9.99999974E-6 : f32
      %206 = vector.broadcast %cst_66 : f32 to vector<16x1xf32>
      %207 = arith.addf %203, %206 : vector<16x1xf32>
      %208 = math.rsqrt %207 : vector<16x1xf32>
      %209 = vector.broadcast %208 : vector<16x1xf32> to vector<16x32xf32>
      %210 = arith.mulf %205, %209 : vector<16x32xf32>
      %211 = vector.broadcast %191 : vector<1x32xf32> to vector<16x32xf32>
      %212 = arith.mulf %210, %211 : vector<16x32xf32>
      %213 = vector.broadcast %192 : vector<1x32xf32> to vector<16x32xf32>
      %214 = arith.addf %212, %213 : vector<16x32xf32>
      %c0_67 = arith.constant 0 : index
      %c0_68 = arith.constant 0 : index
      %c0_69 = arith.constant 0 : index
      %215 = vector.load %arg11[%c0_67, %c0_68, %c0_69] : memref<1x16x32xf32, #tpu.memory_space<vmem>>, vector<1x16x32xf32>
      %216 = vector.shape_cast %215 : vector<1x16x32xf32> to vector<16x32xf32>
      %217 = vector.shape_cast %214 : vector<16x32xf32> to vector<1x16x32xf32>
      tpu.vector_store %arg11[%c0_67, %c0_68, %c0_69], %217 {strides = array<i32>} : memref<1x16x32xf32, #tpu.memory_space<vmem>>, vector<1x16x32xf32>,
    } else {
    }
    return
  }
  func.func @transform_0(%arg0: i32, %arg1: i32) -> (i32, i32, i32) {
    %c0_i32 = arith.constant 0 : i32
    %c0_i32_0 = arith.constant 0 : i32
    %c0_i32_1 = arith.constant 0 : i32
    return %arg0, %c0_i32, %c0_i32_0 : i32, i32, i32
  }
  func.func @transform_1(%arg0: i32, %arg1: i32) -> (i32, i32, i32) {
    %c0_i32 = arith.constant 0 : i32
    %c0_i32_0 = arith.constant 0 : i32
    %c0_i32_1 = arith.constant 0 : i32
    return %arg0, %c0_i32, %c0_i32_0 : i32, i32, i32
  }
  func.func @transform_2(%arg0: i32, %arg1: i32) -> (i32, i32, i32) {
    %c0_i32 = arith.constant 0 : i32
    %c0_i32_0 = arith.constant 0 : i32
    %c0_i32_1 = arith.constant 0 : i32
    return %arg1, %c0_i32, %c0_i32_0 : i32, i32, i32
  }
  func.func @transform_3(%arg0: i32, %arg1: i32) -> (i32, i32, i32) {
    %c0_i32 = arith.constant 0 : i32
    %c0_i32_0 = arith.constant 0 : i32
    %c0_i32_1 = arith.constant 0 : i32
    return %arg1, %c0_i32, %c0_i32_0 : i32, i32, i32
  }
  func.func @transform_4(%arg0: i32, %arg1: i32) -> (i32, i32, i32) {
    %c0_i32 = arith.constant 0 : i32
    %c0_i32_0 = arith.constant 0 : i32
    %c0_i32_1 = arith.constant 0 : i32
    return %arg1, %c0_i32, %c0_i32_0 : i32, i32, i32
  }
  func.func @transform_5(%arg0: i32, %arg1: i32) -> (i32, i32, i32) {
    %c0_i32 = arith.constant 0 : i32
    %c0_i32_0 = arith.constant 0 : i32
    %c0_i32_1 = arith.constant 0 : i32
    return %arg1, %c0_i32, %c0_i32_0 : i32, i32, i32
  }
  func.func @transform_6(%arg0: i32, %arg1: i32) -> (i32, i32, i32) {
    %c0_i32 = arith.constant 0 : i32
    %c0_i32_0 = arith.constant 0 : i32
    %c0_i32_1 = arith.constant 0 : i32
    return %arg1, %c0_i32, %c0_i32_0 : i32, i32, i32
  }
  func.func @transform_7(%arg0: i32, %arg1: i32) -> (i32, i32, i32) {
    %c0_i32 = arith.constant 0 : i32
    %c0_i32_0 = arith.constant 0 : i32
    %c0_i32_1 = arith.constant 0 : i32
    return %arg1, %c0_i32, %c0_i32_0 : i32, i32, i32
  }
  func.func @transform_8(%arg0: i32, %arg1: i32) -> (i32, i32) {
    %c0_i32 = arith.constant 0 : i32
    %c0_i32_0 = arith.constant 0 : i32
    %c0_i32_1 = arith.constant 0 : i32
    return %c0_i32, %c0_i32_0 : i32, i32
  }
  func.func @transform_9(%arg0: i32, %arg1: i32) -> (i32, i32, i32) {
    %c0_i32 = arith.constant 0 : i32
    %c0_i32_0 = arith.constant 0 : i32
    %c0_i32_1 = arith.constant 0 : i32
    return %arg0, %c0_i32, %c0_i32_0 : i32, i32, i32
  }
}

</mosaic_0001>

<bundles_post_ra>
// kernel: tpu_custom_call.1
= control target key start
LH: loop header
LB: loop body
LE: loop exit
PB: predicated region body
PF: predicated region fallthrough
CT: control target
= control target key end

     0   :  { %s5054_s0 = inlined_call_operand.hbm [shape: f32[1,16,32], index: 0, kind: input, shape index: {}]   ;;  %s5055_s1 = inlined_call_operand.hbm [shape: f32[1,2,8], index: 1, kind: input, shape index: {}]   ;;  %s5056_s2 = inlined_call_operand.vmem [shape: bf16[2,32,96], index: 2, kind: input, shape index: {}]   ;;  %s5057_s3 = inlined_call_operand.hbm [shape: bf16[2,32,32], index: 3, kind: input, shape index: {}]   ;;  %s5058_s4 = inlined_call_operand.vmem [shape: f32[2,7,96], index: 4, kind: input, shape index: {}]   ;;  %s5059_s5 = inlined_call_operand.hbm [shape: bf16[2,32,2048], index: 5, kind: input, shape index: {}]   ;;  %s5060_s6 = inlined_call_operand.hbm [shape: f32[2,1,2048], index: 6, kind: input, shape index: {}]   ;;  %s5061_s7 = inlined_call_operand.hbm [shape: bf16[2,32,2048], index: 7, kind: input, shape index: {}]   ;;  %s5062_s8 = inlined_call_operand.vmem [shape: f32[2,32], index: 8, kind: input, shape index: {}]   ;;  %s5063_s9 = inlined_call_operand.hbm [shape: f32[1,16,32], index: 9, kind: output, shape index: {}]  }
   0x1   :  { %5073 = sst [smem:[#allocation21_spill]] %s5054_s0 }
   0x2   :  { %5074 = sst [smem:[#allocation22_spill]] %s5057_s3 }
   0x3   :  { %5075 = sst [smem:[#allocation23_spill]] %s5059_s5 }
   0x4   :  { %5076 = sst [smem:[#allocation24_spill]] %s5062_s8 }
   0x5   :  { %5077 = sst [smem:[#allocation25_spill]] %s5063_s9 }
   0x6   :  { %14 = vsyncpa [#allocation4], 0 }
   0x7   :  { %15 = vsyncpa [#allocation7], 0 }
   0x8   :  { %16 = vsyncpa [#allocation5], 0  ;;  %s4385_s30 = smov 0   ;;  %s4387_s10 = smov 0  }
   0x9   :  { %s4389_s11 = smov 0   ;;  %s4391_s12 = smov 0  }
   0xa   :  { %s4393_s13 = smov 0   ;;  %s4395_s14 = smov 0  }
   0xb LB: > { %5078 = sst [smem:[#allocation17_spill]] %s4290_s11  ;;  %s4414_s15 = sadd.s32 4294967295, %s4302_s14   ;;  %s4302_s14 = sphi %s4395_s14, %s22_s14   ;;  %s4298_s13 = sphi %s4393_s13, %s5108_s13   ;;  %s4294_s12 = sphi %s4391_s12, %s5107_s12   ;;  %s4290_s11 = sphi %s4389_s11, %s5103_s11   ;;  %s4286_s10 = sphi %s4387_s10, %s5106_s10   ;;  %s4282_s30 = sphi %s4385_s30, %s5105_s30  }
   0xc   : > { %5079 = sst [smem:[#allocation18_spill]] %s4302_s14  ;;  %p126_p0 = scmp.ne.s32.totalorder %s4290_s11, %s4286_s10 }
   0xd   : > { %p127_p1 = scmp.eq.s32.totalorder %s4302_s14, 0  ;;  %p132_p2 = scmp.ne.s32.totalorder %s4286_s10, %s4282_s30 }
   0xe   : > { %p5064_p3 = scmp.eq.s32.totalorder %s4414_s15, 0  ;;  %p3592_p5 = scmp.ge.s32.totalorder %s4302_s14, 1 }
   0xf   : > { %p128_p4 = por %p127_p1, %p126_p0  ;;  %p294_p7 = scmp.lt.s32.totalorder %s4302_s14, 3 }
  0x10   : > { %p4425_p6 = por %p5064_p3, %p132_p2  ;;  %s4304_s19 = smov [#allocation3]  }
  0x11   : > { %p4430_p8 = pnand %p3592_p5, %p294_p7  ;;  %s309_s20 = sshll.u32 %s4304_s19, 4  ;;  %s310_s20 = int_to_ptr.vmem [resolvable:$true] %s309_s20 }
  0x12   : > { %s5080_s17 = scalar_select %p4425_p6, 1, 0 }
  0x13   : > { %s5081_s18 = scalar_select %p4430_p8, 1, 0 }
  0x14   : > { %p3886_p9 = pneg %p4430_p8  ;;  %p3908_p10 = scmp.lt.s32.totalorder %s4302_s14, 2 }
  0x15   : > { %s31_s23 = sadd.s32 1, %s4298_s13  ;;  %s4063_s24 = scalar_lea.vmem %s310_s20, 256 }
  0x16   : > { %p4439_p11 = pnand %p3886_p9, %p5064_p3  ;;  %p4443_p12 = pnand %p3908_p10, %p128_p4 }
  0x17   : > { %p4064_p0 = scmp.ne.s32.totalorder %s310_s20, %s4063_s24  ;;  %p4071_p5 = scmp.lt.s32.totalorder %s310_s20, %s310_s20 }
  0x18   : > { %p4054_p13 = pneg %p4439_p11  ;;  %p4072_p7 = scmp.lt.s32.totalorder %s4063_s24, %s4063_s24 }
  0x1a   : > { %p4066_p1 = pnand %p4064_p0, %p4054_p13  ;;  %p4073_p9 = por %p4072_p7, %p4071_p5 }
  0x1c   : > { %p4067_p2 = pneg %p4066_p1 }
  0x1e   : > { %p4074_p3 = pnand %p4073_p9, %p4067_p2 }
  0x20   : > { %4077 = shalt.err (!%p4074_p3)
}
  0x21   : > { %s4305_s25 = smov 128   ;;  %s4306_s26 = smov 8  }
  0x22   : > { %s5084_s0 = sld [smem:[#allocation21_spill]]  ;;  %p32_p4 = scmp.ge.s32.totalorder %s31_s23, 2 }
  0x23   : > { %s347_s29 = sand.u32 1, %s4302_s14   ;;  %s349_s30 = sand.u32 1, %s4290_s11  }
  0x24   : > { %s5110_s23 = smov (%p32_p4, %s31_s23), 0  ;;  %s4462_s19 = sshll.u32 %s349_s30, 4 }
  0x25   : > { %5085 = sst [smem:[#allocation19_spill]] %s5110_s23  ;;  %s116_s24 = ssub.s32 %s4298_s13, %s5110_s23 }
  0x26   : > { %p117_p3 = scmp.eq.s32.totalorder %s116_s24, 0  ;;  %s5067_s16 = sshll.u32 %s4298_s13, 8 }
  0x27   : > { %s5086_s3 = sld [smem:[#allocation22_spill]]  ;;  %s4480_s14 = scalar_lea.sflag [#allocation4], %s347_s29 }
  0x28   : > { %3889 = dma.hbm_to_vmem [thread:$0]  (!%p4439_p11), %s5084_s0, 256, %s310_s20, [#allocation4], %s4305_s25, %s4305_s25, %s4306_s26  }
  0x29   : > { %s351_s20 = scalar_lea.vmem [#allocation8], %s4462_s19  ;;  %s5087_s26 = sadd.s32 1, %s4290_s11 }
  0x2a   : > { %s358_s25 = sshll.u32 %s351_s20, 4  ;;  %s4478_s0 = sshll.u32 %s349_s30, 8  ;;  %s359_s25 = int_to_ptr.vmem [resolvable:$true] %s358_s25 }
  0x2b   : > { %s4476_s28 = scalar_select %p117_p3, %s4290_s11, %s5087_s26  }
  0x2c   : > { %p5070_p10 = pneg %p4443_p12  ;;  %s4091_s23 = scalar_lea.vmem %s359_s25, 256 }
  0x2d   : > { %s357_s27 = scalar_lea.hbm %s5086_s3, %s5067_s16  ;;  %5088 = sst [smem:[#allocation20_spill]] %s4476_s28 }
  0x2e   : > { %p4092_p0 = scmp.ne.s32.totalorder %s359_s25, %s4091_s23  ;;  %s4307_s8 = smov [#allocation8]  }
  0x2f   : > { %s4096_s9 = sshll.u32 %s4307_s8, 4  ;;  %s4097_s9 = int_to_ptr.vmem [resolvable:$false] %s4096_s9 }
  0x30   : > { %p4094_p1 = pnand %p4092_p0, %p5070_p10  ;;  %s4098_s24 = scalar_lea.vmem %s4097_s9, 512 }
  0x31   : > { %p4099_p5 = scmp.lt.s32.totalorder %s359_s25, %s4097_s9  ;;  %p4100_p7 = scmp.lt.s32.totalorder %s4098_s24, %s4091_s23 }
  0x32   : > { %p4095_p2 = pneg %p4094_p1 }
  0x33   : > { %p4101_p9 = por %p4100_p7, %p4099_p5 }
  0x35   : > { %p4102_p4 = pnand %p4101_p9, %p4095_p2 }
  0x37   : > { %4105 = shalt.err (!%p4102_p4)
}
  0x38   : > { %s4308_s30 = smov 64   ;;  %s4309_s29 = smov 4  }
  0x39   : > { %3896 = dma.hbm_to_vmem [thread:$0]  (!%p4443_p12), %s357_s27, 256, %s359_s25, %s4480_s14, %s4308_s30, %s4308_s30, %s4309_s29  }
  0x3a   : > { %s5069_s20 = sshll.u32 %s4298_s13, 12  ;;  %s5089_s5 = sld [smem:[#allocation23_spill]] }
  0x3b   : > { %s379_s9 = scalar_lea.vmem [#allocation9], %s4478_s0  ;;  %s4310_s3 = smov [#allocation9]  }
  0x3c   : > { %s386_s24 = sshll.u32 %s379_s9, 4  ;;  %s4124_s28 = sshll.u32 %s4310_s3, 4  ;;  %s387_s24 = int_to_ptr.vmem [resolvable:$true] %s386_s24  ;;  %s4125_s28 = int_to_ptr.vmem [resolvable:$false] %s4124_s28 }
  0x3d   : > { %s4119_s16 = scalar_lea.vmem %s387_s24, 4096  ;;  %s4126_s11 = scalar_lea.vmem %s4125_s28, 8192 }
  0x3e   : > { %p4120_p3 = scmp.ne.s32.totalorder %s387_s24, %s4119_s16  ;;  %p4127_p2 = scmp.lt.s32.totalorder %s387_s24, %s4125_s28 }
  0x3f   : > { %p4128_p5 = scmp.lt.s32.totalorder %s4126_s11, %s4119_s16 }
  0x40   : > { %s385_s23 = scalar_lea.hbm %s5089_s5, %s5069_s20  ;;  %p4122_p0 = pnand %p4120_p3, %p5070_p10 }
  0x41   : > { %p4129_p7 = por %p4128_p5, %p4127_p2 }
  0x42   : > { %p4123_p1 = pneg %p4122_p0 }
  0x44   : > { %p4130_p9 = pnand %p4129_p7, %p4123_p1 }
  0x46   : > { %4133 = shalt.err (!%p4130_p9)
}
  0x47   : > { %s4311_s27 = smov 1024   ;;  %s5090_s25 = sshll.u32 %s4298_s13, 8 }
  0x48   : > { %3899 = dma.hbm_to_vmem [thread:$0]  (!%p4443_p12), %s385_s23, 4096, %s387_s24, %s4480_s14, %s4311_s27, %s4311_s27, %s4308_s30  }
  0x49   : > { %s406_s28 = scalar_lea.hbm %s5060_s6, %s5090_s25  ;;  %s400_s11 = scalar_lea.vmem [#allocation10], %s4462_s19 }
  0x4a   : > { %s408_s16 = sshll.u32 %s400_s11, 4  ;;  %s4312_s26 = smov [#allocation6]   ;;  %s409_s16 = int_to_ptr.vmem [resolvable:$true] %s408_s16 }
  0x4b   : > { %s325_s8 = sshll.u32 %s4312_s26, 4  ;;  %s4147_s9 = scalar_lea.vmem %s409_s16, 256  ;;  %s326_s8 = int_to_ptr.vmem [resolvable:$true] %s325_s8 }
  0x4c   : > { %p4148_p4 = scmp.ne.s32.totalorder %s409_s16, %s4147_s9  ;;  %s4313_s20 = smov [#allocation10]  }
  0x4d   : > { %s4152_s5 = sshll.u32 %s4313_s20, 4  ;;  %s4153_s5 = int_to_ptr.vmem [resolvable:$false] %s4152_s5 }
  0x4e   : > { %p4150_p3 = pnand %p4148_p4, %p5070_p10  ;;  %s4154_s23 = scalar_lea.vmem %s4153_s5, 512 }
  0x4f   : > { %p4155_p1 = scmp.lt.s32.totalorder %s409_s16, %s4153_s5  ;;  %p4156_p2 = scmp.lt.s32.totalorder %s4154_s23, %s4147_s9 }
  0x50   : > { %p4151_p0 = pneg %p4150_p3 }
  0x51   : > { %p4157_p5 = por %p4156_p2, %p4155_p1 }
  0x53   : > { %p4158_p7 = pnand %p4157_p5, %p4151_p0 }
  0x55   : > { %4161 = shalt.err (!%p4158_p7)
}
  0x56   : > { %3902 = dma.hbm_to_vmem [thread:$0]  (!%p4443_p12), %s406_s28, 256, %s409_s16, %s4480_s14  }
  0x57   : > { %s4173_s19 = scalar_lea.vmem %s326_s8, 32  ;;  %p4181_p10 = scmp.lt.s32.totalorder %s326_s8, %s326_s8 }
  0x58   : > { %p4174_p9 = scmp.ne.s32.totalorder %s326_s8, %s4173_s19  ;;  %p4182_p6 = scmp.lt.s32.totalorder %s4173_s19, %s4173_s19 }
  0x5a   : > { %p4176_p4 = pnand %p4174_p9, %p4054_p13  ;;  %p4183_p8 = por %p4182_p6, %p4181_p10 }
  0x5c   : > { %p4177_p3 = pneg %p4176_p4 }
  0x5e   : > { %p4184_p1 = pnand %p4183_p8, %p4177_p3 }
  0x60   : > { %4187 = shalt.err (!%p4184_p1)
}
  0x61   : > { %3892 = dma.hbm_to_vmem [thread:$0]  (!%p4439_p11), %s5055_s1, 32, %s326_s8, [#allocation7]  }
  0x62   : > { %s5091_s24 = sshll.u32 %s4298_s13, 12  ;;  %s419_s28 = scalar_lea.vmem [#allocation11], %s4478_s0 }
  0x63   : > { %s425_s29 = scalar_lea.hbm %s5061_s7, %s5091_s24  ;;  %s426_s11 = sshll.u32 %s419_s28, 4  ;;  %s427_s11 = int_to_ptr.vmem [resolvable:$true] %s426_s11 }
  0x64   : > { %s4201_s16 = scalar_lea.vmem %s427_s11, 4096  ;;  %p5092_p8 = pneg %p4443_p12 }
  0x65   : > { %p4202_p6 = scmp.ne.s32.totalorder %s427_s11, %s4201_s16  ;;  %s4314_s21 = smov [#allocation11]  }
  0x66   : > { %s4206_s26 = sshll.u32 %s4314_s21, 4  ;;  %s4207_s26 = int_to_ptr.vmem [resolvable:$false] %s4206_s26 }
  0x67   : > { %p4204_p13 = pnand %p4202_p6, %p5092_p8  ;;  %s4208_s9 = scalar_lea.vmem %s4207_s26, 8192 }
  0x68   : > { %p4209_p0 = scmp.lt.s32.totalorder %s427_s11, %s4207_s26  ;;  %p4210_p11 = scmp.lt.s32.totalorder %s4208_s9, %s4201_s16 }
  0x69   : > { %p4205_p10 = pneg %p4204_p13 }
  0x6a   : > { %p4211_p2 = por %p4210_p11, %p4209_p0 }
  0x6c   : > { %p4212_p5 = pnand %p4211_p2, %p4205_p10 }
  0x6e   : > { %4215 = shalt.err (!%p4212_p5)
}
  0x6f   : > { %3905 = dma.hbm_to_vmem [thread:$0]  (!%p4443_p12), %s425_s29, 4096, %s427_s11, %s4480_s14, %s4311_s27, %s4311_s27, %s4308_s30  }
  0x70   : > { %p5093_p7 = scmp.ne.s32.totalorder %s5081_s18, 0 }
  0x71   : > { %p5094_p9 = scmp.eq.s32.totalorder (!%p5093_p7), %s4414_s15, 0 }
  0x72   : > { %438 = sbr.rel (%p5093_p7) target bundleno = 4442 (0x115a), region = 56 }
  0x77   : > { %4265 = dma.done.wait (%p5094_p9), [#allocation4], 256   ;;  %p5095_p4 = pmov %p5094_p9 }
  0x79   : > { %4267 = vsyncadd (%p5095_p4), [#allocation4], 4294967040  ;;  %p5096_p3 = pmov %p5095_p4 }
  0x7b   : > { %4269 = dma.done.wait (%p5096_p3), [#allocation7], 32   ;;  %p5097_p1 = pmov %p5096_p3 }
  0x7c   : > { %s448_s0 = sand.u32 1, %s4414_s15   ;;  %s450_s14 = sand.u32 1, %s4286_s10  }
  0x7d   : > { %4271 = vsyncadd (%p5097_p1), [#allocation7], 4294967264  ;;  %s4555_s22 = sshll.u32 %s450_s14, 4  ;;  %s449_s18 = scalar_lea.sflag [#allocation4], %s448_s0 }
  0x7e   : > { %s452_s30 = scalar_lea.vmem [#allocation8], %s4555_s22  ;;  %p5098_p12 = scmp.ne.s32.totalorder %s5080_s17, 0 }
  0x80   : > { %4273 = dma.done.wait (%p5098_p12), %s449_s18, 8704  }
  0x81   : > { %4275 = vsyncadd (%p5098_p12), %s449_s18, 4294958592  ;;  %s3612_s27 = sshll.u32 %s450_s14, 8  ;;  %p533_p6 = scmp.lt.s32.totalorder %s4294_s12, 1 }
  0x82   : > { %s4572_s28 = scalar_lea.vmem [#allocation9], %s3612_s27  ;;  %s470_s17 = scalar_lea.vmem [#allocation10], %s4555_s22 }
  0x83   : > { %s534_s8 = scalar_select %p533_p6, %s4294_s12, 1 }
  0x84   : > { %s4575_s11 = scalar_lea.vmem [#allocation11], %s3612_s27  ;;  %p3618_p8 = scmp.ne.s32.totalorder %s4294_s12, 0 }
  0x85   : > { %s3731_s23 = sshll.u32 %s534_s8, 4  ;;  %s3617_s19 = sshll.u32 %s534_s8, 3 }
  0x86   : > { %s537_s24 = scalar_lea.vmem %s5056_s2, %s3731_s23  ;;  %s4570_s29 = scalar_lea.vmem %s5058_s4, %s3617_s19 }
  0x87   : > { %546 = sbr.rel (%p3618_p8) target bundleno = 142 (0x8e), region = 84 }
  0x8c   : > { %v547_v0 = vld [vmem:[#allocation3] sm:$0xff]  ;;  %vm549_vm0 = vcmask 261120   ;;  %v548_v1 = vld [vmem:[#allocation3 + $0x8] sm:$0xff] }
  0x8d   : > { %550 = vst.msk [vmem:[#allocation2] sm:$0xff] %vm549_vm0, %v547_v0  ;;  %551 = vst.msk [vmem:[#allocation2 + $0x8] sm:$0xff] %vm549_vm0, %v548_v1 }
  0x8e PF: > { %v4003_v2 = vld [vmem:[%s537_s24 + $0x8] sm:$0xff]   ;;  %v4315_v3 = vmov 0.0   ;;  %v4004_v4 = vld [vmem:[%s537_s24] sm:$0xff]   ;;  %vm4316_vm1 = vmmov 0   ;;  %vm576_vm2 = vcmask 261120   ;;  %v560_v8 = vlaneseq  ;;  %s4317_s16 = smov 96  }
  0x8f   : > { %3770 = vmatprep.subr.bf16.mxu0 %v4315_v3  ;;  %3778 = vmatprep.subr.mxu1 %v4315_v3  ;;  %v4601_v11 = vld [vmem:[%s4570_s29] sm:$0x7f]  ;;  %vm648_vm3 = vcmask 64512   ;;  %v4318_v21 = vmov 1966171168   ;;  %s4319_s21 = smov 64  }
  0x90   : > { %3771 = vmatpush3.bf16.msra.mxu0 %v4003_v2  ;;  %3774 = vmatprep.mubr.msk.bf16.mxu0 %vm4316_vm1, %v4315_v3  ;;  %v4595_v9 = vshrl.u32 %v560_v8, 7  ;;  %v632_v22 = vunpack.c.l.s4 %v4318_v21  ;;  %v3622_v25 = vld.sshfl [vmem:[#allocation6] sm:$0x11 pattern:$0x75316420]  ;;  %s4320_s26 = smov 88  }
  0x91   : > { %3772 = vmatprep.subr.bf16.mxu0 %v4315_v3  ;;  %3780 = vmatprep.mubr.msk.f32.mxu1 %vm4316_vm1, %v4315_v3  ;;  %v630_v26 = vcombine.high %v3622_v25, %v3622_v25  ;;  %s4321_s9 = smov 120   ;;  %s4322_s0 = smov 56   ;;  %vm2016_vm4 = vcmask 130048   ;;  %vm2019_vm5 = vcmask 195584  }
  0x92   : > { %v4598_v10 = vsub.s32 0, %v4595_v9  ;;  %v633_v23 = vunpack.c.0.s8 %v632_v22  ;;  %s4323_s14 = smov 80   ;;  %s4324_s18 = smov 112  }
  0x93   : > { %s4325_s27 = smov 48   ;;  %s4326_s8 = smov 72  }
  0x94   : > { %v4582_v5 = vld [vmem:[#allocation2] sm:$0xff]  ;;  %v4584_v6 = vld [vmem:[#allocation2 + $0x8] sm:$0xff]  ;;  %3773 = vmatpush3.bf16.msra.mxu0 %v4004_v4  ;;  %v563_v12 = vrot.slane %v4601_v11, %v4598_v10  ;;  %v636_v24 = vsub.s32 %v633_v23, %v4595_v9  ;;  %s4327_s23 = smov 104   ;;  %s4328_s19 = smov 40  }
  0x95   : > { %v555_v7 = vpack.c.bf16 %v4584_v6, %v4582_v5  ;;  %3793 = vmatprep.subr.mxu0 %v4315_v3  ;;  %s4329_s5 = smov 8   ;;  %s4330_s20 = smov 16  }
  0x96   : > { %v637_v27 = vrot.slane %v3622_v25, %v636_v24  ;;  %v644_v29 = vrot.slane %v630_v26, %v636_v24  ;;  %s4331_s24 = smov 24   ;;  %p3722_p13 = scmp.ne.s32.totalorder %s4294_s12, 1 }
  0x97   : > { %3775 = vmatmul.mubr.msk.bf16.vlgmr.msra.gmra.mxu0 %vm576_vm2, %v555_v7 }
  0x98   : > { %3795 = vmatprep.mubr.msk.f32.mxu0 %vm4316_vm1, %v4315_v3  ;;  %v4625_v28 = vrot.slane %v637_v27, %v4598_v10  ;;  %v4629_v34 = vrot.slane %v644_v29, %v4598_v10 }
 0x157   : > { %v614_v13 = vpop.f32.mrf.mxu0 }
 0x158   : > { %v4605_v14 = vadd.f32 %v614_v13, %v563_v12 }
 0x159   : > { %v3776_v15 = vpop.f32.mrf.mxu0 }
 0x15a   : > { %646 = vrot.lane.b32.xlu0 %v4605_v14, %s4317_s16 }
 0x15b   : > { %v617_v16 = vpop.f32.mrf.mxu0 }
 0x15c   : > { %v4608_v17 = vadd.f32 %v617_v16, %v563_v12 }
 0x15d   : > { %v3777_v18 = vpop.f32.mrf.mxu0 }
 0x15e   : > { %724 = vrot.lane.b32.xlu0 %v4608_v17, %s4317_s16 }
 0x1cc   : > { %v647_v19 = vpop.permute.xlu0 %646 }
 0x1cd   : > { %3779 = vmatpush3.xpose.msk.msra.mxu1 %vm648_vm3, %v647_v19 }
 0x1ce   : > { %3783 = vmatprep.subr.mxu1 %v4315_v3 }
 0x1d0   : > { %3781 = vmatmul.mubr.msk.f32.vlgmr.msra.gmra.mxu1 %vm648_vm3, %v4605_v14  ;;  %v725_v20 = vpop.permute.xlu0 %724 }
 0x1d1   : > { %3784 = vmatpush3.xpose.msk.msra.mxu1 %vm648_vm3, %v725_v20  ;;  %3785 = vmatprep.mubr.msk.f32.mxu1 %vm4316_vm1, %v4315_v3 }
 0x1d2   : > { %3788 = vmatprep.subr.mxu1 %v4315_v3 }
 0x1d4   : > { %3786 = vmatmul.mubr.msk.f32.vlgmr.msra.gmra.mxu1 %vm648_vm3, %v4608_v17 }
 0x1d5   : > { %3790 = vmatprep.mubr.msk.f32.mxu1 %vm4316_vm1, %v4315_v3 }
 0x290   : > { %v719_v30 = vpop.f32.mrf.mxu1 }
 0x291   : > { %v800_v31 = vmul.f32 0.35355338, %v719_v30 }
 0x292   : > { %v3782_v32 = vpop.f32.mrf.mxu1 }
 0x293   : > { %v812_v33 = vadd.f32 %v4625_v28, %v800_v31 }
 0x294   : > { %v796_v35 = vpop.f32.mrf.mxu1 }
 0x295   : > { %v801_v36 = vmul.f32 0.35355338, %v796_v35  ;;  %v814_v37 = vsel %vm648_vm3, %v812_v33, -inf }
 0x296   : > { %815 = vmax.xlane.f32.xlu1 %v814_v37  ;;  %v3787_v38 = vpop.f32.mrf.mxu1 }
 0x297   : > { %v813_v39 = vadd.f32 %v4629_v34, %v801_v36 }
 0x299   : > { %v817_v40 = vsel %vm648_vm3, %v813_v39, -inf }
 0x29a   : > { %818 = vmax.xlane.f32.xlu1 %v817_v40 }
 0x2ab   : > { %836 = vrot.lane.b32.xlu1 %v4605_v14, %s4319_s21 }
 0x2af   : > { %912 = vrot.lane.b32.xlu1 %v4608_v17, %s4319_s21 }
 0x2b3   : > { %990 = vrot.lane.b32.xlu1 %v4605_v14, %s4320_s26 }
 0x2b7   : > { %1068 = vrot.lane.b32.xlu1 %v4608_v17, %s4320_s26 }
 0x31f   : > { %v816_v41 = vpop.xlane.xlu1 %815 }
 0x320   : > { %v820_v42 = vsub.f32 %v812_v33, %v816_v41 }
 0x322   : > { %v822_v43 = vmul.f32 1.442695, %v820_v42 }
 0x323   : > { %v819_v44 = vpop.xlane.xlu1 %818 }
 0x324   : > { %4007 = vpow2.f32 %v822_v43  ;;  %v821_v45 = vsub.f32 %v813_v39, %v819_v44 }
 0x326   : > { %v824_v46 = vmul.f32 1.442695, %v821_v45 }
 0x327   : > { %v837_v47 = vpop.permute.xlu1 %836 }
 0x328   : > { %4009 = vpow2.f32 %v824_v46  ;;  %3789 = vmatpush3.msra.mxu1 %v837_v47 }
 0x329   : > { %3798 = vmatprep.subr.mxu1 %v4315_v3 }
 0x32b   : > { %v913_v48 = vpop.permute.xlu1 %912 }
 0x32c   : > { %3794 = vmatpush3.msra.mxu0 %v913_v48 }
 0x32d   : > { %3803 = vmatprep.subr.mxu0 %v4315_v3 }
 0x32f   : > { %v991_v53 = vpop.permute.xlu1 %990 }
 0x331   : > { %v4008_v49 = vpop.eup %4007 }
 0x332   : > { %v826_v50 = vsel %vm648_vm3, %v4008_v49, 0.0 }
 0x333   : > { %827 = vadd.xlane.f32.xlu0 %v826_v50  ;;  %v1069_v54 = vpop.permute.xlu1 %1068 }
 0x335   : > { %v4010_v51 = vpop.eup %4009 }
 0x336   : > { %v829_v52 = vsel %vm648_vm3, %v4010_v51, 0.0 }
 0x337   : > { %830 = vadd.xlane.f32.xlu1 %v829_v52 }
 0x348   : > { %1066 = vrot.lane.b32.xlu1 %v4608_v17, %s4321_s9 }
 0x349   : > { %988 = vrot.lane.b32.xlu0 %v4605_v14, %s4321_s9 }
 0x3bc   : > { %v828_v55 = vpop.xlane.xlu0 %827 }
 0x3bd   : > { %4011 = vrcp.f32 %v828_v55 }
 0x3c0   : > { %v831_v56 = vpop.xlane.xlu1 %830  ;;  %v989_v61 = vpop.permute.xlu0 %988 }
 0x3c1   : > { %4013 = vrcp.f32 %v831_v56 }
 0x3c4   : > { %v1067_v62 = vpop.permute.xlu1 %1066 }
 0x3ca   : > { %v4012_v57 = vpop.eup %4011 }
 0x3cb   : > { %v834_v58 = vmul.f32 %v4012_v57, %v4008_v49 }
 0x3cd   : > { %3791 = vmatmul.mubr.msk.f32.vlgmr.msra.gmra.mxu1 %vm648_vm3, %v834_v58 }
 0x3ce   : > { %v4014_v59 = vpop.eup %4013  ;;  %3799 = vmatpush3.xpose.msk.msra.mxu1 %vm648_vm3, %v991_v53  ;;  %3800 = vmatprep.mubr.msk.f32.mxu1 %vm4316_vm1, %v4315_v3 }
 0x3cf   : > { %v835_v60 = vmul.f32 %v4014_v59, %v4010_v51  ;;  %3808 = vmatprep.subr.mxu1 %v4315_v3 }
 0x3d1   : > { %3796 = vmatmul.mubr.msk.f32.vlgmr.msra.gmra.mxu0 %vm648_vm3, %v835_v60  ;;  %3801 = vmatmul.mubr.msk.f32.vlgmr.msra.gmra.mxu1 %vm648_vm3, %v989_v61 }
 0x3d2   : > { %3804 = vmatpush3.xpose.msk.msra.mxu0 %vm648_vm3, %v1069_v54  ;;  %3805 = vmatprep.mubr.msk.f32.mxu0 %vm4316_vm1, %v4315_v3 }
 0x3d3   : > { %3813 = vmatprep.subr.mxu0 %v4315_v3  ;;  %3810 = vmatprep.mubr.msk.f32.mxu1 %vm4316_vm1, %v4315_v3 }
 0x3d5   : > { %3806 = vmatmul.mubr.msk.f32.vlgmr.msra.gmra.mxu0 %vm648_vm3, %v1067_v62 }
 0x3d6   : > { %3815 = vmatprep.mubr.msk.f32.mxu0 %vm4316_vm1, %v4315_v3 }
 0x48d   : > { %v4660_v63 = vpop.f32.mrf.mxu1 }
 0x48f   : > { %v3792_v0 = vpop.f32.mrf.mxu1 }
 0x491   : > { %v4662_v1 = vpop.f32.mrf.mxu0  ;;  %v1062_v2 = vpop.f32.mrf.mxu1 }
 0x492   : > { %v1144_v4 = vmul.f32 0.35355338, %v1062_v2 }
 0x493   : > { %v3797_v7 = vpop.f32.mrf.mxu0  ;;  %v3802_v8 = vpop.f32.mrf.mxu1 }
 0x494   : > { %v1146_v12 = vadd.f32 %v1144_v4, %v4625_v28 }
 0x495   : > { %v1140_v13 = vpop.f32.mrf.mxu0 }
 0x496   : > { %v1145_v15 = vmul.f32 0.35355338, %v1140_v13  ;;  %v1148_v16 = vsel %vm648_vm3, %v1146_v12, -inf }
 0x497   : > { %1149 = vmax.xlane.f32.xlu1 %v1148_v16  ;;  %v3807_v18 = vpop.f32.mrf.mxu0 }
 0x498   : > { %v1147_v19 = vadd.f32 %v1145_v15, %v4629_v34 }
 0x49a   : > { %v1151_v20 = vsel %vm648_vm3, %v1147_v19, -inf }
 0x49b   : > { %1152 = vmax.xlane.f32.xlu0 %v1151_v20 }
 0x4a8   : > { %1170 = vrot.lane.b32.xlu1 %v4605_v14, %s4322_s0 }
 0x4ac   : > { %1324 = vrot.lane.b32.xlu1 %v4605_v14, %s4323_s14 }
 0x4b0   : > { %1402 = vrot.lane.b32.xlu1 %v4608_v17, %s4323_s14 }
 0x4b1   : > { %1246 = vrot.lane.b32.xlu0 %v4608_v17, %s4322_s0 }
 0x4b5   : > { %1322 = vrot.lane.b32.xlu0 %v4605_v14, %s4324_s18 }
 0x520   : > { %v1150_v21 = vpop.xlane.xlu1 %1149 }
 0x521   : > { %v1154_v22 = vsub.f32 %v1146_v12, %v1150_v21 }
 0x523   : > { %v1156_v23 = vmul.f32 1.442695, %v1154_v22 }
 0x524   : > { %v1171_v24 = vpop.permute.xlu1 %1170  ;;  %v1153_v25 = vpop.xlane.xlu0 %1152 }
 0x525   : > { %4015 = vpow2.f32 %v1156_v23  ;;  %v1155_v26 = vsub.f32 %v1147_v19, %v1153_v25  ;;  %3809 = vmatpush3.msra.mxu1 %v1171_v24 }
 0x526   : > { %3818 = vmatprep.subr.mxu1 %v4315_v3 }
 0x527   : > { %v1158_v27 = vmul.f32 1.442695, %v1155_v26 }
 0x528   : > { %v1247_v29 = vpop.permute.xlu0 %1246  ;;  %v1325_v35 = vpop.permute.xlu1 %1324 }
 0x529   : > { %4017 = vpow2.f32 %v1158_v27  ;;  %3814 = vmatpush3.msra.mxu0 %v1247_v29 }
 0x52a   : > { %3823 = vmatprep.subr.mxu0 %v4315_v3 }
 0x52c   : > { %v1403_v36 = vpop.permute.xlu1 %1402  ;;  %v1323_v43 = vpop.permute.xlu0 %1322 }
 0x532   : > { %v4016_v30 = vpop.eup %4015 }
 0x533   : > { %v1160_v31 = vsel %vm648_vm3, %v4016_v30, 0.0 }
 0x534   : > { %1161 = vadd.xlane.f32.xlu1 %v1160_v31 }
 0x536   : > { %v4018_v32 = vpop.eup %4017 }
 0x537   : > { %v1163_v33 = vsel %vm648_vm3, %v4018_v32, 0.0 }
 0x538   : > { %1164 = vadd.xlane.f32.xlu1 %v1163_v33 }
 0x549   : > { %1400 = vrot.lane.b32.xlu1 %v4608_v17, %s4324_s18 }
 0x5bd   : > { %v1162_v37 = vpop.xlane.xlu1 %1161 }
 0x5be   : > { %4019 = vrcp.f32 %v1162_v37 }
 0x5c1   : > { %v1165_v38 = vpop.xlane.xlu1 %1164 }
 0x5c2   : > { %4021 = vrcp.f32 %v1165_v38 }
 0x5c5   : > { %v1401_v44 = vpop.permute.xlu1 %1400 }
 0x5cb   : > { %v4020_v39 = vpop.eup %4019 }
 0x5cc   : > { %v1168_v40 = vmul.f32 %v4020_v39, %v4016_v30 }
 0x5ce   : > { %3811 = vmatmul.mubr.msk.f32.vlgmr.msra.gmra.mxu1 %vm648_vm3, %v1168_v40 }
 0x5cf   : > { %v4022_v41 = vpop.eup %4021  ;;  %3819 = vmatpush3.xpose.msk.msra.mxu1 %vm648_vm3, %v1325_v35  ;;  %3820 = vmatprep.mubr.msk.f32.mxu1 %vm4316_vm1, %v4315_v3 }
 0x5d0   : > { %v1169_v42 = vmul.f32 %v4022_v41, %v4018_v32  ;;  %3828 = vmatprep.subr.mxu1 %v4315_v3 }
 0x5d2   : > { %3816 = vmatmul.mubr.msk.f32.vlgmr.msra.gmra.mxu0 %vm648_vm3, %v1169_v42  ;;  %3821 = vmatmul.mubr.msk.f32.vlgmr.msra.gmra.mxu1 %vm648_vm3, %v1323_v43 }
 0x5d3   : > { %3824 = vmatpush3.xpose.msk.msra.mxu0 %vm648_vm3, %v1403_v36  ;;  %3825 = vmatprep.mubr.msk.f32.mxu0 %vm4316_vm1, %v4315_v3 }
 0x5d4   : > { %3833 = vmatprep.subr.mxu0 %v4315_v3  ;;  %3830 = vmatprep.mubr.msk.f32.mxu1 %vm4316_vm1, %v4315_v3 }
 0x5d6   : > { %3826 = vmatmul.mubr.msk.f32.vlgmr.msra.gmra.mxu0 %vm648_vm3, %v1401_v44 }
 0x5d7   : > { %3835 = vmatprep.mubr.msk.f32.mxu0 %vm4316_vm1, %v4315_v3 }
 0x68e   : > { %v4694_v45 = vpop.f32.mrf.mxu1 }
 0x690   : > { %v3812_v46 = vpop.f32.mrf.mxu1 }
 0x692   : > { %v4696_v47 = vpop.f32.mrf.mxu0  ;;  %v1396_v48 = vpop.f32.mrf.mxu1 }
 0x693   : > { %v3988_v49 = vpack.i.bf16 %v4696_v47, %v4694_v45  ;;  %v1478_v50 = vmul.f32 0.35355338, %v1396_v48 }
 0x694   : > { %v3817_v51 = vpop.f32.mrf.mxu0  ;;  %v3822_v52 = vpop.f32.mrf.mxu1 }
 0x695   : > { %v1480_v53 = vadd.f32 %v1478_v50, %v4625_v28 }
 0x696   : > { %v1474_v54 = vpop.f32.mrf.mxu0 }
 0x697   : > { %v1479_v55 = vmul.f32 0.35355338, %v1474_v54  ;;  %v1482_v56 = vsel %vm648_vm3, %v1480_v53, -inf }
 0x698   : > { %1483 = vmax.xlane.f32.xlu0 %v1482_v56  ;;  %v3827_v57 = vpop.f32.mrf.mxu0 }
 0x699   : > { %v1481_v58 = vadd.f32 %v1479_v55, %v4629_v34 }
 0x69b   : > { %v1485_v59 = vsel %vm648_vm3, %v1481_v58, -inf }
 0x69c   : > { %1486 = vmax.xlane.f32.xlu1 %v1485_v59 }
 0x6ad   : > { %1504 = vrot.lane.b32.xlu1 %v4605_v14, %s4325_s27 }
 0x6b1   : > { %1658 = vrot.lane.b32.xlu1 %v4605_v14, %s4326_s8 }
 0x6b5   : > { %1736 = vrot.lane.b32.xlu1 %v4608_v17, %s4326_s8 }
 0x6b9   : > { %1734 = vrot.lane.b32.xlu1 %v4608_v17, %s4327_s23 }
 0x721   : > { %v1484_v60 = vpop.xlane.xlu0 %1483 }
 0x722   : > { %v1488_v61 = vsub.f32 %v1480_v53, %v1484_v60  ;;  %v4006_v60 = vld [vmem:[%s452_s30] sm:$0xff]  }
 0x724   : > { %v1490_v62 = vmul.f32 1.442695, %v1488_v61 }
 0x725   : > { %v1487_v0 = vpop.xlane.xlu1 %1486 }
 0x726   : > { %4023 = vpow2.f32 %v1490_v62  ;;  %v1489_v2 = vsub.f32 %v1481_v58, %v1487_v0 }
 0x728   : > { %v1492_v4 = vmul.f32 1.442695, %v1489_v2 }
 0x729   : > { %v1505_v7 = vpop.permute.xlu1 %1504 }
 0x72a   : > { %4025 = vpow2.f32 %v1492_v4  ;;  %3829 = vmatpush3.msra.mxu1 %v1505_v7 }
 0x72b   : > { %3838 = vmatprep.subr.mxu1 %v4315_v3 }
 0x72d   : > { %v1659_v20 = vpop.permute.xlu1 %1658 }
 0x731   : > { %v1737_v24 = vpop.permute.xlu1 %1736 }
 0x733   : > { %v4024_v8 = vpop.eup %4023 }
 0x734   : > { %v1494_v12 = vsel %vm648_vm3, %v4024_v8, 0.0 }
 0x735   : > { %1495 = vadd.xlane.f32.xlu0 %v1494_v12  ;;  %v1735_v27 = vpop.permute.xlu1 %1734 }
 0x737   : > { %v4026_v13 = vpop.eup %4025 }
 0x738   : > { %v1497_v15 = vsel %vm648_vm3, %v4026_v13, 0.0 }
 0x739   : > { %1498 = vadd.xlane.f32.xlu0 %v1497_v15 }
 0x74f   : > { %1580 = vrot.lane.b32.xlu0 %v4608_v17, %s4325_s27 }
 0x753   : > { %1656 = vrot.lane.b32.xlu0 %v4605_v14, %s4327_s23 }
 0x7be   : > { %v1496_v16 = vpop.xlane.xlu0 %1495 }
 0x7bf   : > { %4027 = vrcp.f32 %v1496_v16 }
 0x7c2   : > { %v1499_v18 = vpop.xlane.xlu0 %1498 }
 0x7c3   : > { %4029 = vrcp.f32 %v1499_v18 }
 0x7c6   : > { %v1581_v19 = vpop.permute.xlu0 %1580 }
 0x7c7   : > { %3834 = vmatpush3.msra.mxu0 %v1581_v19 }
 0x7c8   : > { %3843 = vmatprep.subr.mxu0 %v4315_v3 }
 0x7ca   : > { %v1657_v26 = vpop.permute.xlu0 %1656 }
 0x7cc   : > { %v4028_v21 = vpop.eup %4027 }
 0x7cd   : > { %v1502_v22 = vmul.f32 %v4028_v21, %v4024_v8 }
 0x7cf   : > { %3831 = vmatmul.mubr.msk.f32.vlgmr.msra.gmra.mxu1 %vm648_vm3, %v1502_v22 }
 0x7d0   : > { %v4030_v23 = vpop.eup %4029  ;;  %3839 = vmatpush3.xpose.msk.msra.mxu1 %vm648_vm3, %v1659_v20  ;;  %3840 = vmatprep.mubr.msk.f32.mxu1 %vm4316_vm1, %v4315_v3 }
 0x7d1   : > { %v1503_v25 = vmul.f32 %v4030_v23, %v4026_v13  ;;  %3848 = vmatprep.subr.mxu1 %v4315_v3 }
 0x7d3   : > { %3836 = vmatmul.mubr.msk.f32.vlgmr.msra.gmra.mxu0 %vm648_vm3, %v1503_v25  ;;  %3841 = vmatmul.mubr.msk.f32.vlgmr.msra.gmra.mxu1 %vm648_vm3, %v1657_v26 }
 0x7d4   : > { %3844 = vmatpush3.xpose.msk.msra.mxu0 %vm648_vm3, %v1737_v24  ;;  %3845 = vmatprep.mubr.msk.f32.mxu0 %vm4316_vm1, %v4315_v3 }
 0x7d5   : > { %3853 = vmatprep.subr.mxu0 %v4315_v3  ;;  %3850 = vmatprep.mubr.msk.f32.mxu1 %vm4316_vm1, %v4315_v3 }
 0x7d7   : > { %3846 = vmatmul.mubr.msk.f32.vlgmr.msra.gmra.mxu0 %vm648_vm3, %v1735_v27  ;;  %v4758_v27 = vsub.s32 1, %v4595_v9 }
 0x7d8   : > { %3855 = vmatprep.mubr.msk.f32.mxu0 %vm4316_vm1, %v4315_v3 }
 0x88f   : > { %v1576_v29 = vpop.f32.mrf.mxu1 }
 0x891   : > { %v3832_v30 = vpop.f32.mrf.mxu1 }
 0x893   : > { %v1652_v31 = vpop.f32.mrf.mxu0  ;;  %v1730_v32 = vpop.f32.mrf.mxu1 }
 0x894   : > { %v1812_v33 = vmul.f32 0.35355338, %v1730_v32 }
 0x895   : > { %v3837_v35 = vpop.f32.mrf.mxu0  ;;  %v3842_v36 = vpop.f32.mrf.mxu1 }
 0x896   : > { %v1814_v37 = vadd.f32 %v1812_v33, %v4625_v28  ;;  %v3993_v28 = vpack.i.bf16 %v1652_v31, %v1576_v29  ;;  %v2030_v29 = vrot.slane %v4601_v11, %v4758_v27 }
 0x897   : > { %v1808_v38 = vpop.f32.mrf.mxu0 }
 0x898   : > { %v1813_v39 = vmul.f32 0.35355338, %v1808_v38  ;;  %v1816_v40 = vsel %vm648_vm3, %v1814_v37, -inf }
 0x899   : > { %1817 = vmax.xlane.f32.xlu0 %v1816_v40  ;;  %v3847_v41 = vpop.f32.mrf.mxu0 }
 0x89a   : > { %v1815_v42 = vadd.f32 %v1813_v39, %v4629_v34 }
 0x89c   : > { %v1819_v43 = vsel %vm648_vm3, %v1815_v42, -inf }
 0x89d   : > { %1820 = vmax.xlane.f32.xlu1 %v1819_v43 }
 0x8ae   : > { %1838 = vrot.lane.b32.xlu1 %v4605_v14, %s4328_s19 }
 0x8b2   : > { %3989 = vrot.lane.b32.xlu1 %v3988_v49, %s4329_s5 }
 0x8b6   : > { %3994 = vrot.lane.b32.xlu1 %v3993_v28, %s4330_s20 }
 0x922   : > { %v1818_v44 = vpop.xlane.xlu0 %1817 }
 0x923   : > { %v1822_v46 = vsub.f32 %v1814_v37, %v1818_v44 }
 0x925   : > { %v1824_v48 = vmul.f32 1.442695, %v1822_v46 }
 0x926   : > { %v1821_v50 = vpop.xlane.xlu1 %1820 }
 0x927   : > { %4031 = vpow2.f32 %v1824_v48  ;;  %v1823_v34 = vsub.f32 %v1815_v42, %v1821_v50  ;;  %v2145_v48 = vld [vmem:[%s4572_s28 + $0x80] sm:$0xff] }
 0x928   : > { %v2153_v50 = vld [vmem:[%s4572_s28 + $0xc0] sm:$0xff] }
 0x929   : > { %v1826_v51 = vmul.f32 1.442695, %v1823_v34  ;;  %v2146_v34 = vld [vmem:[%s4572_s28 + $0x88] sm:$0xff] }
 0x92a   : > { %v1839_v52 = vpop.permute.xlu1 %1838 }
 0x92b   : > { %4033 = vpow2.f32 %v1826_v51  ;;  %3849 = vmatpush3.msra.mxu1 %v1839_v52  ;;  %v3667_v51 = vcombine.high %v2145_v48, %v2153_v50  ;;  %v2154_v52 = vld [vmem:[%s4572_s28 + $0xc8] sm:$0xff] }
 0x92c   : > { %3858 = vmatprep.subr.bf16.mxu1 %v4315_v3 }
 0x92e   : > { %v3990_v7 = vpop.permute.xlu1 %3989 }
 0x92f   : > { %v3992_v12 = vunpack.i.h.bf16 %v3990_v7  ;;  %v3991_v13 = vunpack.i.l.bf16 %v3990_v7 }
 0x931   : > { %v2014_v19 = vsel %vm648_vm3, %v4660_v63, %v3991_v13 }
 0x932   : > { %v3995_v8 = vpop.permute.xlu1 %3994 }
 0x933   : > { %v3997_v15 = vunpack.i.h.bf16 %v3995_v8  ;;  %v3996_v16 = vunpack.i.l.bf16 %v3995_v8 }
 0x934   : > { %v4032_v14 = vpop.eup %4031 }
 0x935   : > { %v1828_v53 = vsel %vm648_vm3, %v4032_v14, 0.0  ;;  %v2017_v22 = vsel %vm2016_vm4, %v2014_v19, %v3996_v16  ;;  %v4783_v19 = vsub.s32 2, %v4595_v9 }
 0x936   : > { %1829 = vadd.xlane.f32.xlu0 %v1828_v53  ;;  %v3668_v53 = vcombine.low %v2146_v34, %v2154_v52 }
 0x938   : > { %v4034_v45 = vpop.eup %4033 }
 0x939   : > { %v1831_v47 = vsel %vm648_vm3, %v4034_v45, 0.0 }
 0x93a   : > { %1832 = vadd.xlane.f32.xlu0 %v1831_v47  ;;  %v2129_v47 = vld [vmem:[%s4572_s28] sm:$0xff] }
 0x950   : > { %1914 = vrot.lane.b32.xlu0 %v4608_v17, %s4328_s19  ;;  %v4005_v17 = vld [vmem:[%s452_s30 + $0x8] sm:$0xff]   ;;  %s5099_s30 = sld [smem:[#allocation24_spill]] (!%p3722_p13) }
 0x9bf   : > { %v1830_v49 = vpop.xlane.xlu0 %1829 }
 0x9c0   : > { %4035 = vrcp.f32 %v1830_v49  ;;  %v2137_v49 = vld [vmem:[%s4572_s28 + $0x40] sm:$0xff] }
 0x9c3   : > { %v1833_v54 = vpop.xlane.xlu0 %1832 }
 0x9c4   : > { %4037 = vrcp.f32 %v1833_v54  ;;  %v2130_v54 = vld [vmem:[%s4572_s28 + $0x8] sm:$0xff] }
 0x9c7   : > { %v1915_v55 = vpop.permute.xlu0 %1914 }
 0x9c8   : > { %3854 = vmatpush3.msra.mxu0 %v1915_v55  ;;  %v3651_v55 = vcombine.high %v2129_v47, %v2137_v49 }
 0x9c9   : > { %2420 = vmatprep.subr.bf16.mxu0 %v3667_v51 }
 0x9cd   : > { %v4036_v56 = vpop.eup %4035 }
 0x9ce   : > { %v1836_v57 = vmul.f32 %v4036_v56, %v4032_v14  ;;  %v3666_v14 = vcombine.low %v2145_v48, %v2153_v50  ;;  %v2138_v56 = vld [vmem:[%s4572_s28 + $0x48] sm:$0xff] }
 0x9cf   : > { %v2142_v48 = vld [vmem:[%s4572_s28 + $0x68] sm:$0xff] }
 0x9d0   : > { %3851 = vmatmul.mubr.msk.f32.vlgmr.msra.gmra.mxu1 %vm648_vm3, %v1836_v57  ;;  %v3650_v57 = vcombine.low %v2129_v47, %v2137_v49  ;;  %v2160_v47 = vld [vmem:[%s4572_s28 + $0xf8] sm:$0xff] }
 0x9d1   : > { %v4038_v58 = vpop.eup %4037  ;;  %3862 = vmatprep.mubr.msk.bf16.mxu1 %vm4316_vm1, %v4315_v3  ;;  %3859 = vmatpush3.bf16.msra.mxu1 %v4005_v17  ;;  %v2147_v17 = vld [vmem:[%s4572_s28 + $0x90] sm:$0xff] }
 0x9d2   : > { %v1837_v59 = vmul.f32 %v4038_v58, %v4034_v45  ;;  %3860 = vmatprep.subr.bf16.mxu1 %v4315_v3  ;;  %v2015_v3 = vsel %vm648_vm3, %v4662_v1, %v3992_v12  ;;  %v3669_v45 = vcombine.high %v2146_v34, %v2154_v52  ;;  %v3652_v58 = vcombine.low %v2130_v54, %v2138_v56 }
 0x9d3   : > { %v2018_v23 = vsel %vm2016_vm4, %v2015_v3, %v3997_v15 }
 0x9d4   : > { %3856 = vmatmul.mubr.msk.f32.vlgmr.msra.gmra.mxu0 %vm648_vm3, %v1837_v59  ;;  %v3653_v59 = vcombine.high %v2130_v54, %v2138_v56 }
 0x9d5   : > { %3861 = vmatpush3.bf16.msra.mxu1 %v4006_v60  ;;  %2421 = vmatpush1.bf16.msra.mxu0 %v3666_v14  ;;  %v2155_v60 = vld [vmem:[%s4572_s28 + $0xd0] sm:$0xff] }
 0x9d6   : > { %2463 = vmatprep.subr.bf16.mxu1 %v3669_v45  ;;  %2422 = vmatprep.subr.bf16.mxu0 %v3651_v55  ;;  %v2151_v14 = vld [vmem:[%s4572_s28 + $0xb0] sm:$0xff]  ;;  %v2152_v45 = vld [vmem:[%s4572_s28 + $0xb8] sm:$0xff] }
 0x9d7   : > { %v3681_v56 = vcombine.high %v2152_v45, %v2160_v47 }
 0x9d9   : > { %2423 = vmatpush1.bf16.msra.mxu0 %v3650_v57  ;;  %v2135_v57 = vld [vmem:[%s4572_s28 + $0x30] sm:$0xff] }
 0xa90   : > { %v1910_v61 = vpop.f32.mrf.mxu1 }
 0xa92   : > { %v3852_v62 = vpop.f32.mrf.mxu1 }
 0xa93   : > { %v4332_v62 = vmov 0  }
 0xa94   : > { %v1986_v0 = vpop.f32.mrf.mxu0  ;;  %2440 = vmatprep.mubr.bf16.mxu0 %v4332_v62 }
 0xa95   : > { %v3998_v2 = vpack.i.bf16 %v1986_v0, %v1910_v61  ;;  %v2148_v61 = vld [vmem:[%s4572_s28 + $0x98] sm:$0xff]  ;;  %v3671_v0 = vcombine.high %v2147_v17, %v2155_v60 }
 0xa96   : > { %v3857_v4 = vpop.f32.mrf.mxu0 }
 0xa97   : > { %3999 = vrot.lane.b32.xlu0 %v3998_v2, %s4331_s24  ;;  %v2156_v2 = vld [vmem:[%s4572_s28 + $0xd8] sm:$0xff]  ;;  %v3670_v4 = vcombine.low %v2147_v17, %v2155_v60  ;;  %2506 = vmatprep.subr.bf16.mxu0 %v3671_v0 }
 0xa98   : > { %v3672_v7 = vcombine.low %v2148_v61, %v2156_v2  ;;  %v3673_v8 = vcombine.high %v2148_v61, %v2156_v2  ;;  %v2144_v17 = vld [vmem:[%s4572_s28 + $0x78] sm:$0xff]  ;;  %v3680_v61 = vcombine.low %v2152_v45, %v2160_v47 }
 0xb09   : > { %v4000_v18 = vpop.permute.xlu0 %3999 }
 0xb0a   : > { %v4002_v20 = vunpack.i.h.bf16 %v4000_v18  ;;  %v4001_v21 = vunpack.i.l.bf16 %v4000_v18 }
 0xb0c   : > { %v2021_v24 = vsel %vm2019_vm5, %v2018_v23, %v4002_v20  ;;  %v2020_v25 = vsel %vm2019_vm5, %v2017_v22, %v4001_v21  ;;  %v2119_v21 = vrot.slane %v4601_v11, %v4783_v19  ;;  %v4788_v22 = vsub.s32 3, %v4595_v9 }
 0xb0d   : > { %v2022_v26 = vpack.c.bf16 %v2021_v24, %v2020_v25 }
 0xb0e   : > { %v2125_v25 = vrot.slane %v4601_v11, %v4788_v22  ;;  %v2149_v11 = vld [vmem:[%s4572_s28 + $0xa0] sm:$0xff] }
 0xb0f   : > { %3863 = vmatmul.mubr.msk.bf16.vlgmr.msra.gmra.mxu1 %vm576_vm2, %v2022_v26 }
 0xb10   : > { %2464 = vmatpush1.bf16.msra.mxu1 %v3668_v53  ;;  %2483 = vmatprep.mubr.bf16.mxu1 %v4332_v62  ;;  %v2159_v53 = vld [vmem:[%s4572_s28 + $0xf0] sm:$0xff] }
 0xb11   : > { %2465 = vmatprep.subr.bf16.mxu1 %v3653_v59  ;;  %v3679_v55 = vcombine.high %v2151_v14, %v2159_v53  ;;  %v2136_v59 = vld [vmem:[%s4572_s28 + $0x38] sm:$0xff]  ;;  %v3678_v60 = vcombine.low %v2151_v14, %v2159_v53 }
 0xb12   : > { %v3665_v2 = vcombine.high %v2136_v59, %v2144_v17 }
 0xb14   : > { %2466 = vmatpush1.bf16.msra.mxu1 %v3652_v58  ;;  %v2143_v58 = vld [vmem:[%s4572_s28 + $0x70] sm:$0xff] }
 0xb15   : > { %2549 = vmatprep.subr.bf16.mxu1 %v3673_v8  ;;  %v3663_v0 = vcombine.high %v2135_v57, %v2143_v58  ;;  %v2817_v8 = vld [vmem:[%s4575_s11 + $0x88] sm:$0xff] }
 0xbcf   : > { %v2080_v30 = vpop.f32.mrf.mxu1 }
 0xbd0   : > { %v2081_v1 = vadd.f32 %v2080_v30, %v2030_v29 }
 0xbd1   : > { %v3864_v31 = vpop.f32.mrf.mxu1 }
 0xbd2   : > { %v2087_v63 = vadd.f32 %v2081_v1, %v4582_v5  ;;  %v2131_v1 = vld [vmem:[%s4572_s28 + $0x10] sm:$0xff] }
 0xbd3   : > { %v2083_v32 = vpop.f32.mrf.mxu1  ;;  %v2139_v31 = vld [vmem:[%s4572_s28 + $0x50] sm:$0xff] }
 0xbd4   : > { %v2084_v33 = vadd.f32 %v2083_v32, %v2030_v29  ;;  %v2089_v35 = vsel %vm576_vm2, %v2087_v63, 0.0  ;;  %v2140_v32 = vld [vmem:[%s4572_s28 + $0x58] sm:$0xff] }
 0xbd5   : > { %2090 = vadd.xlane.f32.xlu1 %v2089_v35  ;;  %v3865_v36 = vpop.f32.mrf.mxu1 }
 0xbd6   : > { %v2088_v37 = vadd.f32 %v2084_v33, %v4584_v6 }
 0xbd8   : > { %v2092_v38 = vsel %vm576_vm2, %v2088_v37, 0.0 }
 0xbd9   : > { %2093 = vadd.xlane.f32.xlu0 %v2092_v38 }
 0xc5e   : > { %v2091_v39 = vpop.xlane.xlu1 %2090 }
 0xc5f   : > { %v2096_v40 = vmul.f32 0.03125, %v2091_v39  ;;  %v2157_v39 = vld [vmem:[%s4572_s28 + $0xe0] sm:$0xff] }
 0xc60   : > { %v3674_v50 = vcombine.low %v2149_v11, %v2157_v39 }
 0xc61   : > { %v2098_v41 = vsub.f32 %v2087_v63, %v2096_v40  ;;  %v2132_v63 = vld [vmem:[%s4572_s28 + $0x18] sm:$0xff]  ;;  %v2150_v40 = vld [vmem:[%s4572_s28 + $0xa8] sm:$0xff] }
 0xc62   : > { %v2094_v42 = vpop.xlane.xlu0 %2093  ;;  %v3657_v38 = vcombine.high %v2132_v63, %v2140_v32 }
 0xc63   : > { %v2097_v5 = vmul.f32 0.03125, %v2094_v42  ;;  %v2100_v43 = vmul.f32 %v2098_v41, %v2098_v41  ;;  %v3654_v42 = vcombine.low %v2131_v1, %v2139_v31 }
 0xc65   : > { %v2099_v28 = vsub.f32 %v2088_v37, %v2097_v5  ;;  %v2102_v44 = vsel %vm576_vm2, %v2100_v43, 0.0  ;;  %v3655_v37 = vcombine.high %v2131_v1, %v2139_v31  ;;  %v3656_v5 = vcombine.low %v2132_v63, %v2140_v32  ;;  %v4851_v1 = vld [vmem:[%s4575_s11 + $0x90] sm:$0xff]  ;;  %v4857_v63 = vld [vmem:[%s4575_s11 + $0x98] sm:$0xff] }
 0xc66   : > { %2103 = vadd.xlane.f32.xlu0 %v2102_v44  ;;  %v3675_v43 = vcombine.high %v2149_v11, %v2157_v39  ;;  %v2133_v44 = vld [vmem:[%s4572_s28 + $0x20] sm:$0xff]  ;;  %v4854_v31 = vld [vmem:[%s4575_s11 + $0xd0] sm:$0xff] }
 0xc67   : > { %v2101_v46 = vmul.f32 %v2099_v28, %v2099_v28  ;;  %v3711_v32 = vcombine.high %v4851_v1, %v4854_v31  ;;  %v4872_v39 = vld [vmem:[%s470_s17] sm:$0xff] }
 0xc69   : > { %v2105_v6 = vsel %vm576_vm2, %v2101_v46, 0.0  ;;  %v2141_v46 = vld [vmem:[%s4572_s28 + $0x60] sm:$0xff] }
 0xc6a   : > { %2106 = vadd.xlane.f32.xlu1 %v2105_v6  ;;  %v2134_v6 = vld [vmem:[%s4572_s28 + $0x28] sm:$0xff]  ;;  %v3659_v51 = vcombine.high %v2133_v44, %v2141_v46  ;;  %v3658_v49 = vcombine.low %v2133_v44, %v2141_v46 }
 0xc6b   : > { %v3661_v52 = vcombine.high %v2134_v6, %v2142_v48  ;;  %v3660_v54 = vcombine.low %v2134_v6, %v2142_v48 }
 0xcef   : > { %v2104_v12 = vpop.xlane.xlu0 %2103 }
 0xcf0   : > { %v2108_v13 = vmul.f32 0.03125, %v2104_v12  ;;  %v2825_v12 = vld [vmem:[%s4575_s11 + $0xc8] sm:$0xff] }
 0xcf2   : > { %v2110_v15 = vadd.f32 1e-05, %v2108_v13  ;;  %v3662_v13 = vcombine.low %v2135_v57, %v2143_v58 }
 0xcf3   : > { %v2107_v16 = vpop.xlane.xlu1 %2106 }
 0xcf4   : > { %4039 = vrsqrt.f32 %v2110_v15  ;;  %v2109_v18 = vmul.f32 0.03125, %v2107_v16  ;;  %v3664_v15 = vcombine.low %v2136_v59, %v2144_v17 }
 0xcf6   : > { %v2111_v3 = vadd.f32 1e-05, %v2109_v18  ;;  %v3709_v18 = vcombine.high %v2817_v8, %v2825_v12 }
 0xcf8   : > { %4041 = vrsqrt.f32 %v2111_v3 }
 0xd01   : > { %v4040_v20 = vpop.eup %4039 }
 0xd02   : > { %v2114_v23 = vmul.f32 %v4040_v20, %v2098_v41  ;;  %v2158_v41 = vld [vmem:[%s4572_s28 + $0xe8] sm:$0xff]  ;;  %v3708_v20 = vcombine.low %v2817_v8, %v2825_v12 }
 0xd03   : > { %v3676_v34 = vcombine.low %v2150_v40, %v2158_v41 }
 0xd04   : > { %v2120_v26 = vmul.f32 %v2119_v21, %v2114_v23  ;;  %v2801_v23 = vld [vmem:[%s4575_s11 + $0x8] sm:$0xff] }
 0xd05   : > { %v4042_v24 = vpop.eup %4041 }
 0xd06   : > { %v2115_v29 = vmul.f32 %v4042_v24, %v2099_v28  ;;  %v4796_v33 = vadd.f32 %v2125_v25, %v2120_v26  ;;  %v3677_v28 = vcombine.high %v2150_v40, %v2158_v41 }
 0xd08   : > { %v2121_v30 = vmul.f32 %v2119_v21, %v2115_v29  ;;  %v2800_v21 = vld [vmem:[%s4575_s11] sm:$0xff] }
 0xd0a   : > { %v4798_v35 = vadd.f32 %v2125_v25, %v2121_v30  ;;  %v2809_v25 = vld [vmem:[%s4575_s11 + $0x48] sm:$0xff] }
 0xd0b   : > { %v3692_v29 = vcombine.low %v2801_v23, %v2809_v25  ;;  %v3693_v30 = vcombine.high %v2801_v23, %v2809_v25 }
 0xd0c   : > { %v4802_v36 = vpack.c.bf16 %v4798_v35, %v4796_v33 }
 0xd0e   : > { %3682 = vmatmul.mubr.msk.bf16.vlgmr.msra.gmra.mxu0 %vm576_vm2, %v4802_v36  ;;  %3683 = vmatmul.mubr.msk.bf16.vlgmr.msra.gmra.mxu1 %vm576_vm2, %v4802_v36 }
 0xd0f   : > { %2507 = vmatpush1.bf16.msra.mxu0 %v3670_v4  ;;  %2550 = vmatpush1.bf16.msra.mxu1 %v3672_v7  ;;  %v2816_v4 = vld [vmem:[%s4575_s11 + $0x80] sm:$0xff] }
 0xd10   : > { %2508 = vmatprep.subr.bf16.mxu0 %v3655_v37  ;;  %2551 = vmatprep.subr.bf16.mxu1 %v3657_v38  ;;  %v2824_v7 = vld [vmem:[%s4575_s11 + $0xc0] sm:$0xff]  ;;  %v3710_v37 = vcombine.low %v4851_v1, %v4854_v31 }
 0xd11   : > { %2526 = vmatprep.mubr.bf16.mxu0 %v4332_v62  ;;  %2569 = vmatprep.mubr.bf16.mxu1 %v4332_v62  ;;  %v3707_v16 = vcombine.high %v2816_v4, %v2824_v7  ;;  %v3706_v3 = vcombine.low %v2816_v4, %v2824_v7  ;;  %v4937_v1 = vld [vmem:[%s4575_s11 + $0xe0] sm:$0xff] }
 0xd13   : > { %2509 = vmatpush1.bf16.msra.mxu0 %v3654_v42  ;;  %2552 = vmatpush1.bf16.msra.mxu1 %v3656_v5  ;;  %v2172_v42 = vrot.slane %v4872_v39, %v4758_v27  ;;  %v2180_v5 = vrot.slane %v4872_v39, %v4788_v22 }
 0xd14   : > { %2592 = vmatprep.subr.bf16.mxu0 %v3675_v43  ;;  %2635 = vmatprep.subr.bf16.mxu1 %v3677_v28  ;;  %v2168_v43 = vrot.slane %v4872_v39, %v4598_v10  ;;  %v2176_v28 = vrot.slane %v4872_v39, %v4783_v19 }
 0xd16   : > { %3684 = vmatmul.mubr.msk.bf16.vlgmr.msra.gmra.mxu0 %vm576_vm2, %v4802_v36  ;;  %3685 = vmatmul.mubr.msk.bf16.vlgmr.msra.gmra.mxu1 %vm576_vm2, %v4802_v36 }
 0xd17   : > { %2593 = vmatpush1.bf16.msra.mxu0 %v3674_v50  ;;  %2636 = vmatpush1.bf16.msra.mxu1 %v3676_v34  ;;  %v4883_v50 = vsub.s32 5, %v4595_v9  ;;  %v2195_v34 = vsub.s32 7, %v4595_v9 }
 0xd18   : > { %2594 = vmatprep.subr.bf16.mxu0 %v3659_v51  ;;  %2637 = vmatprep.subr.bf16.mxu1 %v3661_v52 }
 0xd19   : > { %2612 = vmatprep.mubr.bf16.mxu0 %v4332_v62  ;;  %2655 = vmatprep.mubr.bf16.mxu1 %v4332_v62 }
 0xd1b   : > { %2595 = vmatpush1.bf16.msra.mxu0 %v3658_v49  ;;  %2638 = vmatpush1.bf16.msra.mxu1 %v3660_v54 }
 0xd1c   : > { %2678 = vmatprep.subr.bf16.mxu0 %v3679_v55  ;;  %2721 = vmatprep.subr.bf16.mxu1 %v3681_v56 }
 0xd1e   : > { %3686 = vmatmul.mubr.msk.bf16.vlgmr.msra.gmra.mxu0 %vm576_vm2, %v4802_v36  ;;  %3687 = vmatmul.mubr.msk.bf16.vlgmr.msra.gmra.mxu1 %vm576_vm2, %v4802_v36 }
 0xd1f   : > { %2679 = vmatpush1.bf16.msra.mxu0 %v3678_v60  ;;  %2722 = vmatpush1.bf16.msra.mxu1 %v3680_v61  ;;  %v2188_v60 = vrot.slane %v4872_v39, %v4883_v50  ;;  %v2196_v61 = vrot.slane %v4872_v39, %v2195_v34 }
 0xd20   : > { %2680 = vmatprep.subr.bf16.mxu0 %v3663_v0  ;;  %2723 = vmatprep.subr.bf16.mxu1 %v3665_v2  ;;  %v4896_v0 = vld [vmem:[%s4575_s11 + $0x10] sm:$0xff] }
 0xd21   : > { %2698 = vmatprep.mubr.bf16.mxu0 %v4332_v62  ;;  %2741 = vmatprep.mubr.bf16.mxu1 %v4332_v62  ;;  %v2808_v62 = vld [vmem:[%s4575_s11 + $0x40] sm:$0xff]  ;;  %v4899_v2 = vld [vmem:[%s4575_s11 + $0x50] sm:$0xff] }
 0xd22   : > { %v3691_v24 = vcombine.high %v2800_v21, %v2808_v62  ;;  %v3690_v26 = vcombine.low %v2800_v21, %v2808_v62 }
 0xd23   : > { %2681 = vmatpush1.bf16.msra.mxu0 %v3662_v13  ;;  %2724 = vmatpush1.bf16.msra.mxu1 %v3664_v15  ;;  %v4902_v13 = vld [vmem:[%s4575_s11 + $0x18] sm:$0xff] }
 0xd24   : > { %3008 = vmatprep.subr.bf16.mxu0 %v3707_v16  ;;  %3049 = vmatprep.subr.bf16.mxu1 %v3709_v18  ;;  %v4905_v15 = vld [vmem:[%s4575_s11 + $0x58] sm:$0xff] }
 0xd26   : > { %3688 = vmatmul.mubr.msk.bf16.vlgmr.msra.gmra.mxu0 %vm576_vm2, %v4802_v36  ;;  %3689 = vmatmul.mubr.msk.bf16.vlgmr.msra.gmra.mxu1 %vm576_vm2, %v4802_v36  ;;  %v4862_v36 = vld [vmem:[%s4575_s11 + $0xd8] sm:$0xff] }
 0xd27   : > { %3009 = vmatpush1.bf16.xpose.msra.mxu0 %v3706_v3  ;;  %3050 = vmatpush1.bf16.xpose.msra.mxu1 %v3708_v20  ;;  %v3712_v38 = vcombine.low %v4857_v63, %v4862_v36  ;;  %v3713_v11 = vcombine.high %v4857_v63, %v4862_v36 }
 0xd28   : > { %3010 = vmatprep.subr.bf16.mxu0 %v3691_v24  ;;  %3051 = vmatprep.subr.bf16.mxu1 %v3693_v30  ;;  %v3697_v30 = vcombine.high %v4902_v13, %v4905_v15 }
 0xd2f   : > { %3011 = vmatpush1.bf16.xpose.msra.mxu0 %v3690_v26  ;;  %3052 = vmatpush1.bf16.xpose.msra.mxu1 %v3692_v29  ;;  %v3695_v29 = vcombine.high %v4896_v0, %v4899_v2 }
 0xd30   : > { %3090 = vmatprep.subr.bf16.mxu0 %v3711_v32  ;;  %3131 = vmatprep.subr.bf16.mxu1 %v3713_v11 }
 0xdce   : > { %v2442_v40 = vpop.f32.mrf.mxu0  ;;  %v2485_v41 = vpop.f32.mrf.mxu1 }
 0xdcf   : > { %v2443_v45 = vadd.f32 %v2442_v40, %v2168_v43  ;;  %v2486_v47 = vadd.f32 %v2485_v41, %v2176_v28  ;;  %v4912_v40 = vsub.s32 4, %v4595_v9  ;;  %v4915_v41 = vsub.s32 6, %v4595_v9 }
 0xdd0   : > { %v2444_v44 = vpop.f32.mrf.mxu0  ;;  %v2487_v46 = vpop.f32.mrf.mxu1 }
 0xdd1   : > { %v2445_v51 = vadd.f32 %v2444_v44, %v2172_v42  ;;  %v2488_v52 = vadd.f32 %v2487_v46, %v2180_v5  ;;  %v2752_v16 = vmax.f32 %v2443_v45, 0.0  ;;  %v2754_v18 = vmax.f32 %v2486_v47, 0.0  ;;  %v4925_v44 = vld [vmem:[%s470_s17 + $0x8] sm:$0xff] }
 0xdd2   : > { %v2446_v6 = vpop.f32.mrf.mxu0  ;;  %v2489_v48 = vpop.f32.mrf.mxu1  ;;  %v2212_v47 = vrot.slane %v4925_v44, %v4788_v22 }
 0xdd3   : > { %v2447_v14 = vadd.f32 %v2446_v6, %v2168_v43  ;;  %v2490_v53 = vadd.f32 %v2489_v48, %v2176_v28  ;;  %v2753_v4 = vmax.f32 %v2445_v51, 0.0  ;;  %v2755_v7 = vmax.f32 %v2488_v52, 0.0  ;;  %v4934_v51 = vld [vmem:[%s4575_s11 + $0xa0] sm:$0xff]  ;;  %v2829_v52 = vld [vmem:[%s4575_s11 + $0xe8] sm:$0xff] }
 0xdd4   : > { %v2448_v49 = vpop.f32.mrf.mxu0  ;;  %v2491_v54 = vpop.f32.mrf.mxu1  ;;  %v2204_v48 = vrot.slane %v4925_v44, %v4758_v27 }
 0xdd5   : > { %v2449_v55 = vadd.f32 %v2448_v49, %v2172_v42  ;;  %v2492_v56 = vadd.f32 %v2491_v54, %v2180_v5  ;;  %v2768_v57 = vmax.f32 %v2447_v14, 0.0  ;;  %v2770_v58 = vmax.f32 %v2490_v53, 0.0 }
 0xdd6   : > { %v4886_v59 = vpop.f32.mrf.mxu0  ;;  %v4888_v17 = vpop.f32.mrf.mxu1  ;;  %v2184_v14 = vrot.slane %v4872_v39, %v4912_v40  ;;  %v2192_v53 = vrot.slane %v4872_v39, %v4915_v41  ;;  %v3715_v39 = vcombine.high %v4934_v51, %v4937_v1 }
 0xdd7   : > { %v2769_v8 = vmax.f32 %v2449_v55, 0.0  ;;  %v2771_v12 = vmax.f32 %v2492_v56, 0.0  ;;  %v2784_v23 = vpack.c.bf16 %v2768_v57, %v2752_v16  ;;  %v2786_v24 = vpack.c.bf16 %v2770_v58, %v2754_v18 }
 0xdd8   : > { %v2530_v3 = vpop.f32.mrf.mxu0  ;;  %v2573_v20 = vpop.f32.mrf.mxu1  ;;  %v3694_v56 = vcombine.low %v4896_v0, %v4899_v2  ;;  %v3696_v57 = vcombine.low %v4902_v13, %v4905_v15  ;;  %v2529_v22 = vadd.f32 %v4886_v59, %v2184_v14 }
 0xdd9   : > { %v2785_v21 = vpack.c.bf16 %v2769_v8, %v2753_v4  ;;  %v2787_v62 = vpack.c.bf16 %v2771_v12, %v2755_v7  ;;  %v2531_v32 = vadd.f32 %v2530_v3, %v2188_v60  ;;  %v2574_v11 = vadd.f32 %v2573_v20, %v2196_v61 }
 0xdda   : > { %v2532_v25 = vpop.f32.mrf.mxu0  ;;  %v2575_v26 = vpop.f32.mrf.mxu1  ;;  %v2572_v12 = vadd.f32 %v4888_v17, %v2192_v53 }
 0xddb   : > { %3028 = vmatprep.mubr.bf16.mxu0 %v2785_v21  ;;  %3069 = vmatprep.mubr.bf16.mxu1 %v2787_v62  ;;  %v2757_v31 = vmax.f32 %v2531_v32, 0.0  ;;  %v2533_v58 = vadd.f32 %v2532_v25, %v2184_v14  ;;  %v2813_v32 = vld [vmem:[%s4575_s11 + $0x68] sm:$0xff] }
 0xddc   : > { %v2534_v42 = vpop.f32.mrf.mxu0  ;;  %v2577_v5 = vpop.f32.mrf.mxu1  ;;  %3029 = vmatmul.mubr.bf16.vlgmr.msra.gmra.mxu0 %v2784_v23  ;;  %3070 = vmatmul.mubr.bf16.vlgmr.msra.gmra.mxu1 %v2786_v24  ;;  %v2804_v23 = vld [vmem:[%s4575_s11 + $0x20] sm:$0xff]  ;;  %v2756_v24 = vmax.f32 %v2529_v22, 0.0  ;;  %v2758_v25 = vmax.f32 %v2572_v12, 0.0 }
 0xddd   : > { %v2535_v43 = vadd.f32 %v2534_v42, %v2188_v60  ;;  %v2578_v28 = vadd.f32 %v2577_v5, %v2196_v61  ;;  %3091 = vmatpush1.bf16.xpose.msra.mxu0 %v3710_v37  ;;  %3132 = vmatpush1.bf16.xpose.msra.mxu1 %v3712_v38  ;;  %v2759_v37 = vmax.f32 %v2574_v11, 0.0  ;;  %v2821_v38 = vld [vmem:[%s4575_s11 + $0xa8] sm:$0xff]  ;;  %v2576_v60 = vadd.f32 %v2575_v26, %v2192_v53 }
 0xdde   : > { %v4927_v46 = vpop.f32.mrf.mxu0  ;;  %v4929_v6 = vpop.f32.mrf.mxu1  ;;  %3092 = vmatprep.subr.bf16.mxu0 %v3695_v29  ;;  %3133 = vmatprep.subr.bf16.mxu1 %v3697_v30  ;;  %v3717_v7 = vcombine.high %v2821_v38, %v2829_v52  ;;  %v2772_v18 = vmax.f32 %v2533_v58, 0.0  ;;  %v2812_v29 = vld [vmem:[%s4575_s11 + $0x60] sm:$0xff]  ;;  %v2805_v30 = vld [vmem:[%s4575_s11 + $0x28] sm:$0xff]  ;;  %v3714_v5 = vcombine.low %v4934_v51, %v4937_v1  ;;  %v2822_v51 = vld [vmem:[%s4575_s11 + $0xb0] sm:$0xff] }
 0xddf   : > { %v2773_v63 = vmax.f32 %v2535_v43, 0.0  ;;  %v2775_v36 = vmax.f32 %v2578_v28, 0.0  ;;  %v2774_v3 = vmax.f32 %v2576_v60, 0.0  ;;  %v2830_v1 = vld [vmem:[%s4575_s11 + $0xf0] sm:$0xff]  ;;  %v3700_v58 = vcombine.low %v2805_v30, %v2813_v32 }
 0xde0   : > { %v2616_v45 = vpop.f32.mrf.mxu0  ;;  %v2659_v49 = vpop.f32.mrf.mxu1  ;;  %v2788_v43 = vpack.c.bf16 %v2772_v18, %v2756_v24  ;;  %v3719_v60 = vcombine.high %v2822_v51, %v2830_v1 }
 0xde1   : > { %v2789_v54 = vpack.c.bf16 %v2773_v63, %v2757_v31  ;;  %v2791_v55 = vpack.c.bf16 %v2775_v36, %v2759_v37  ;;  %v2617_v8 = vadd.f32 %v2616_v45, %v2204_v48  ;;  %v2660_v0 = vadd.f32 %v2659_v49, %v2212_v47  ;;  %v2831_v45 = vld [vmem:[%s4575_s11 + $0xf8] sm:$0xff] }
 0xde2   : > { %v2618_v61 = vpop.f32.mrf.mxu0  ;;  %v4951_v4 = vpop.f32.mrf.mxu1  ;;  %v2790_v28 = vpack.c.bf16 %v2774_v3, %v2758_v25  ;;  %v3716_v37 = vcombine.low %v2821_v38, %v2829_v52  ;;  %v3699_v63 = vcombine.high %v2804_v23, %v2812_v29  ;;  %v3701_v36 = vcombine.high %v2805_v30, %v2813_v32  ;;  %v2823_v52 = vld [vmem:[%s4575_s11 + $0xb8] sm:$0xff] }
 0xde3   : > { %3110 = vmatprep.mubr.bf16.mxu0 %v2789_v54  ;;  %3151 = vmatprep.mubr.bf16.mxu1 %v2791_v55  ;;  %v2761_v59 = vmax.f32 %v2617_v8, 0.0  ;;  %v2763_v26 = vmax.f32 %v2660_v0, 0.0  ;;  %v2200_v38 = vrot.slane %v4925_v44, %v4598_v10  ;;  %v3698_v54 = vcombine.low %v2804_v23, %v2812_v29 }
 0xde4   : > { %v2620_v2 = vpop.f32.mrf.mxu0  ;;  %v2663_v13 = vpop.f32.mrf.mxu1  ;;  %v3721_v8 = vcombine.high %v2823_v52, %v2831_v45  ;;  %v3718_v3 = vcombine.low %v2822_v51, %v2830_v1  ;;  %v3720_v23 = vcombine.low %v2823_v52, %v2831_v45 }
 0xde5   : > { %v2621_v15 = vadd.f32 %v2620_v2, %v2204_v48  ;;  %v2664_v16 = vadd.f32 %v2663_v13, %v2212_v47  ;;  %3093 = vmatpush1.bf16.xpose.msra.mxu0 %v3694_v56  ;;  %3134 = vmatpush1.bf16.xpose.msra.mxu1 %v3696_v57  ;;  %v2208_v47 = vrot.slane %v4925_v44, %v4783_v19 }
 0xde6   : > { %v4957_v20 = vpop.f32.mrf.mxu0  ;;  %v4959_v21 = vpop.f32.mrf.mxu1  ;;  %3172 = vmatprep.subr.bf16.mxu0 %v3715_v39  ;;  %3213 = vmatprep.subr.bf16.mxu1 %v3717_v7  ;;  %v2619_v55 = vadd.f32 %v2618_v61, %v2200_v38  ;;  %v2220_v56 = vrot.slane %v4925_v44, %v4883_v50  ;;  %v2228_v7 = vrot.slane %v4925_v44, %v2195_v34 }
 0xde7   : > { %v2777_v17 = vmax.f32 %v2621_v15, 0.0  ;;  %v2779_v62 = vmax.f32 %v2664_v16, 0.0  ;;  %v2662_v39 = vadd.f32 %v4951_v4, %v2208_v47  ;;  %v2615_v19 = vadd.f32 %v4927_v46, %v2200_v38  ;;  %v2806_v15 = vld [vmem:[%s4575_s11 + $0x30] sm:$0xff] }
 0xde8   : > { %v2702_v42 = vpop.f32.mrf.mxu0  ;;  %v2745_v31 = vpop.f32.mrf.mxu1  ;;  %v2658_v61 = vadd.f32 %v4929_v6, %v2208_v47  ;;  %v2776_v0 = vmax.f32 %v2619_v55, 0.0  ;;  %v2814_v16 = vld [vmem:[%s4575_s11 + $0x70] sm:$0xff]  ;;  %v2815_v6 = vld [vmem:[%s4575_s11 + $0x78] sm:$0xff] }
 0xde9   : > { %v2793_v11 = vpack.c.bf16 %v2777_v17, %v2761_v59  ;;  %v2795_v48 = vpack.c.bf16 %v2779_v62, %v2763_v26  ;;  %v2703_v2 = vadd.f32 %v2702_v42, %v2220_v56  ;;  %v2778_v4 = vmax.f32 %v2662_v39, 0.0  ;;  %v2807_v59 = vld [vmem:[%s4575_s11 + $0x38] sm:$0xff] }
 0xdea   : > { %v4967_v14 = vpop.f32.mrf.mxu0  ;;  %v4969_v53 = vpop.f32.mrf.mxu1  ;;  %v2746_v9 = vadd.f32 %v2745_v31, %v2228_v7  ;;  %v2760_v34 = vmax.f32 %v2615_v19, 0.0  ;;  %v2762_v18 = vmax.f32 %v2658_v61, 0.0  ;;  %v3703_v26 = vcombine.high %v2806_v15, %v2814_v16 }
 0xdeb   : > { %v2765_v62 = vmax.f32 %v2703_v2, 0.0  ;;  %v3705_v30 = vcombine.high %v2807_v59, %v2815_v6  ;;  %v2224_v42 = vrot.slane %v4925_v44, %v4915_v41 }
 0xdec   : > { %3111 = vmatmul.mubr.bf16.vlgmr.msra.gmra.mxu0 %v2788_v43  ;;  %3152 = vmatmul.mubr.bf16.vlgmr.msra.gmra.mxu1 %v2790_v28  ;;  %v2706_v49 = vpop.f32.mrf.mxu0  ;;  %v2749_v57 = vpop.f32.mrf.mxu1  ;;  %v2792_v17 = vpack.c.bf16 %v2776_v0, %v2760_v34  ;;  %v2794_v24 = vpack.c.bf16 %v2778_v4, %v2762_v18  ;;  %v2767_v25 = vmax.f32 %v2746_v9, 0.0  ;;  %v3704_v28 = vcombine.low %v2807_v59, %v2815_v6 }
 0xded   : > { %3173 = vmatpush1.bf16.xpose.msra.mxu0 %v3714_v5  ;;  %3192 = vmatprep.mubr.bf16.mxu0 %v2793_v11  ;;  %v2707_v22 = vadd.f32 %v2706_v49, %v2220_v56  ;;  %v2750_v12 = vadd.f32 %v2749_v57, %v2228_v7  ;;  %v2216_v11 = vrot.slane %v4925_v44, %v4912_v40 }
 0xdee   : > { %3214 = vmatpush1.bf16.xpose.msra.mxu1 %v3716_v37  ;;  %3233 = vmatprep.mubr.bf16.mxu1 %v2795_v48  ;;  %v3702_v5 = vcombine.low %v2806_v15, %v2814_v16  ;;  %v2748_v48 = vadd.f32 %v4969_v53, %v2224_v42  ;;  %v2744_v37 = vadd.f32 %v4959_v21, %v2224_v42 }
 0xdef   : > { %3174 = vmatprep.subr.bf16.mxu0 %v3699_v63  ;;  %3215 = vmatprep.subr.bf16.mxu1 %v3701_v36  ;;  %v2781_v13 = vmax.f32 %v2707_v22, 0.0  ;;  %v2783_v46 = vmax.f32 %v2750_v12, 0.0  ;;  %v2705_v43 = vadd.f32 %v4967_v14, %v2216_v11  ;;  %v2701_v31 = vadd.f32 %v4957_v20, %v2216_v11 }
 0xdf0   : > { %v2782_v36 = vmax.f32 %v2748_v48, 0.0  ;;  %v2766_v1 = vmax.f32 %v2744_v37, 0.0 }
 0xdf1   : > { %v2797_v29 = vpack.c.bf16 %v2781_v13, %v2765_v62  ;;  %v2799_v32 = vpack.c.bf16 %v2783_v46, %v2767_v25  ;;  %v2780_v63 = vmax.f32 %v2705_v43, 0.0  ;;  %v2764_v51 = vmax.f32 %v2701_v31, 0.0 }
 0xdf2   : > { %v2798_v52 = vpack.c.bf16 %v2782_v36, %v2766_v1 }
 0xdf3   : > { %v2796_v38 = vpack.c.bf16 %v2780_v63, %v2764_v51 }
 0xdf5   : > { %3175 = vmatpush1.bf16.xpose.msra.mxu0 %v3698_v54 }
 0xdf6   : > { %3216 = vmatpush1.bf16.xpose.msra.mxu1 %v3700_v58  ;;  %3254 = vmatprep.subr.bf16.mxu0 %v3719_v60 }
 0xdf7   : > { %3295 = vmatprep.subr.bf16.mxu1 %v3721_v8  ;;  %v4047_v8 = vld [vmem:[%s4570_s29] sm:$0x7f] }
 0xdf8   : > { %v2835_v19 = vrot.slane %v4047_v8, %v4912_v40 }
 0xdfc   : > { %3193 = vmatmul.mubr.bf16.vlgmr.msra.gmra.mxu0 %v2792_v17 }
 0xdfd   : > { %3234 = vmatmul.mubr.bf16.vlgmr.msra.gmra.mxu1 %v2794_v24  ;;  %3255 = vmatpush1.bf16.xpose.msra.mxu0 %v3718_v3 }
 0xdfe   : > { %3274 = vmatprep.mubr.bf16.mxu0 %v2797_v29  ;;  %3296 = vmatpush1.bf16.xpose.msra.mxu1 %v3720_v23 }
 0xdff   : > { %3315 = vmatprep.mubr.bf16.mxu1 %v2799_v32  ;;  %3256 = vmatprep.subr.bf16.mxu0 %v3703_v26 }
 0xe00   : > { %3297 = vmatprep.subr.bf16.mxu1 %v3705_v30 }
 0xe05   : > { %3257 = vmatpush1.bf16.xpose.msra.mxu0 %v3702_v5 }
 0xe06   : > { %3298 = vmatpush1.bf16.xpose.msra.mxu1 %v3704_v28 }
 0xe0c   : > { %3275 = vmatmul.mubr.bf16.vlgmr.msra.gmra.mxu0 %v2796_v38 }
 0xe0d   : > { %3316 = vmatmul.mubr.bf16.vlgmr.msra.gmra.mxu1 %v2798_v52 }
 0xe9c   : > { %v3030_v44 = vpop.f32.mrf.mxu0  ;;  %v3071_v14 = vpop.f32.mrf.mxu1 }
 0xe9d   : > { %v3031_v22 = vadd.f32 %v3030_v44, %v2835_v19 }
 0xe9e   : > { %v3032_v45 = vpop.f32.mrf.mxu0  ;;  %v3073_v47 = vpop.f32.mrf.mxu1 }
 0xe9f   : > { %v3072_v2 = vadd.f32 %v3071_v14, %v3031_v22 }
 0xea0   : > { %v3033_v53 = vpop.f32.mrf.mxu0  ;;  %v3074_v49 = vpop.f32.mrf.mxu1 }
 0xea1   : > { %v3034_v4 = vadd.f32 %v3033_v53, %v2835_v19 }
 0xea2   : > { %v3035_v20 = vpop.f32.mrf.mxu0  ;;  %v3076_v54 = vpop.f32.mrf.mxu1 }
 0xea3   : > { %v3075_v18 = vadd.f32 %v3074_v49, %v3034_v4 }
 0xeac   : > { %v3112_v21 = vpop.f32.mrf.mxu0  ;;  %v3153_v55 = vpop.f32.mrf.mxu1 }
 0xead   : > { %v3113_v13 = vadd.f32 %v3112_v21, %v3072_v2 }
 0xeae   : > { %v3114_v56 = vpop.f32.mrf.mxu0  ;;  %v3155_v57 = vpop.f32.mrf.mxu1 }
 0xeaf   : > { %v3154_v3 = vadd.f32 %v3153_v55, %v3113_v13  ;;  %v3355_v56 = vrot.slane %v4047_v8, %v4883_v50 }
 0xeb0   : > { %v3115_v58 = vpop.f32.mrf.mxu0  ;;  %v3156_v60 = vpop.f32.mrf.mxu1 }
 0xeb1   : > { %v3116_v59 = vadd.f32 %v3115_v58, %v3075_v18  ;;  %v3361_v58 = vrot.slane %v4047_v8, %v4915_v41 }
 0xeb2   : > { %v3117_v39 = vpop.f32.mrf.mxu0  ;;  %v3158_v7 = vpop.f32.mrf.mxu1 }
 0xeb3   : > { %v3157_v17 = vadd.f32 %v3156_v60, %v3116_v59 }
 0xebc   : > { %v3194_v61 = vpop.f32.mrf.mxu0 }
 0xebd   : > { %v3235_v12 = vpop.f32.mrf.mxu1  ;;  %v3195_v6 = vadd.f32 %v3194_v61, %v3154_v3 }
 0xebe   : > { %v3196_v0 = vpop.f32.mrf.mxu0 }
 0xebf   : > { %v3237_v9 = vpop.f32.mrf.mxu1  ;;  %v3236_v62 = vadd.f32 %v3235_v12, %v3195_v6 }
 0xec0   : > { %v3197_v34 = vpop.f32.mrf.mxu0 }
 0xec1   : > { %v3238_v15 = vpop.f32.mrf.mxu1  ;;  %v3198_v23 = vadd.f32 %v3197_v34, %v3157_v17 }
 0xec2   : > { %v3199_v16 = vpop.f32.mrf.mxu0 }
 0xec3   : > { %v3240_v46 = vpop.f32.mrf.mxu1  ;;  %v3239_v29 = vadd.f32 %v3238_v15, %v3198_v23 }
 0xecc   : > { %v3276_v40 = vpop.f32.mrf.mxu0 }
 0xecd   : > { %v3277_v24 = vadd.f32 %v3276_v40, %v3236_v62  ;;  %v3317_v25 = vpop.f32.mrf.mxu1 }
 0xece   : > { %v3278_v26 = vpop.f32.mrf.mxu0 }
 0xecf   : > { %v3318_v30 = vadd.f32 %v3317_v25, %v3277_v24  ;;  %v3319_v32 = vpop.f32.mrf.mxu1 }
 0xed0   : > { %v3279_v11 = vpop.f32.mrf.mxu0 }
 0xed1   : > { %v3280_v42 = vadd.f32 %v3279_v11, %v3239_v29  ;;  %v3320_v5 = vpop.f32.mrf.mxu1  ;;  %v3324_v43 = vadd.f32 %v3318_v30, %v4796_v33 }
 0xed2   : > { %v3281_v28 = vpop.f32.mrf.mxu0 }
 0xed3   : > { %v3321_v48 = vadd.f32 %v3320_v5, %v3280_v42  ;;  %v3322_v31 = vpop.f32.mrf.mxu1  ;;  %v3326_v37 = vsel %vm576_vm2, %v3324_v43, 0.0 }
 0xed4   : > { %3327 = vadd.xlane.f32.xlu0 %v3326_v37 }
 0xed5   : > { %v3325_v63 = vadd.f32 %v3321_v48, %v4798_v35 }
 0xed7   : > { %v3329_v36 = vsel %vm576_vm2, %v3325_v63, 0.0 }
 0xed8   : > { %3330 = vadd.xlane.f32.xlu1 %v3329_v36 }
 0xf5d   : > { %v3328_v51 = vpop.xlane.xlu0 %3327 }
 0xf5e   : > { %v3332_v1 = vmul.f32 0.03125, %v3328_v51 }
 0xf60   : > { %v3334_v38 = vsub.f32 %v3324_v43, %v3332_v1 }
 0xf61   : > { %v3331_v52 = vpop.xlane.xlu1 %3330 }
 0xf62   : > { %v3333_v44 = vmul.f32 0.03125, %v3331_v52  ;;  %v3336_v14 = vmul.f32 %v3334_v38, %v3334_v38 }
 0xf64   : > { %v3335_v45 = vsub.f32 %v3325_v63, %v3333_v44  ;;  %v3338_v33 = vsel %vm576_vm2, %v3336_v14, 0.0 }
 0xf65   : > { %3339 = vadd.xlane.f32.xlu0 %v3338_v33 }
 0xf66   : > { %v3337_v47 = vmul.f32 %v3335_v45, %v3335_v45 }
 0xf68   : > { %v3341_v53 = vsel %vm576_vm2, %v3337_v47, 0.0 }
 0xf69   : > { %3342 = vadd.xlane.f32.xlu1 %v3341_v53 }
 0xfee   : > { %v3340_v49 = vpop.xlane.xlu0 %3339 }
 0xfef   : > { %v3344_v20 = vmul.f32 0.03125, %v3340_v49 }
 0xff1   : > { %v3346_v35 = vadd.f32 1e-05, %v3344_v20 }
 0xff2   : > { %v3343_v54 = vpop.xlane.xlu1 %3342 }
 0xff3   : > { %4043 = vrsqrt.f32 %v3346_v35  ;;  %v3345_v21 = vmul.f32 0.03125, %v3343_v54 }
 0xff5   : > { %v3347_v55 = vadd.f32 1e-05, %v3345_v21 }
 0xff7   : > { %4045 = vrsqrt.f32 %v3347_v55 }
0x1000   : > { %v4044_v57 = vpop.eup %4043 }
0x1001   : > { %v3350_v60 = vmul.f32 %v4044_v57, %v3334_v38 }
0x1003   : > { %v3356_v39 = vmul.f32 %v3355_v56, %v3350_v60 }
0x1004   : > { %v4046_v7 = vpop.eup %4045 }
0x1005   : > { %v3362_v19 = vadd.f32 %v3361_v58, %v3356_v39  ;;  %v3351_v22 = vmul.f32 %v4046_v7, %v3335_v45 }
0x1007   : > { %3364 = vst.msk [vmem:[#allocation2] sm:$0xff] %vm576_vm2, %v3362_v19  ;;  %v3357_v61 = vmul.f32 %v3355_v56, %v3351_v22  ;;  %3369 = sbr.rel (%p3722_p13) target bundleno = 4421 (0x1145), region = 88 }
0x1009   : > { %v3363_v12 = vadd.f32 %v3361_v58, %v3357_v61 }
0x100b   : > { %3365 = vst.msk [vmem:[#allocation2 + $0x8] sm:$0xff] %vm576_vm2, %v3363_v12 }
0x100c   : > { %v3371_v0 = vsel %vm576_vm2, %v3362_v19, 0.0  ;;  %v3374_v50 = vsel %vm576_vm2, %v3363_v12, 0.0  ;;  %v3370_v23 = vld [vmem:[%s5099_s30] sm:$0x3] }
0x100d   : > { %3372 = vadd.xlane.f32.xlu0 %v3371_v0  ;;  %v3400_v40 = vrot.slane %v3370_v23, %v4598_v10  ;;  %v3406_v26 = vrot.slane %v3370_v23, %v4758_v27 }
0x1011   : > { %3375 = vadd.xlane.f32.xlu0 %v3374_v50 }
0x1096   : > { %v3373_v41 = vpop.xlane.xlu0 %3372 }
0x1097   : > { %v3377_v8 = vmul.f32 0.03125, %v3373_v41 }
0x1099   : > { %v3379_v2 = vsub.f32 %v3362_v19, %v3377_v8 }
0x109a   : > { %v3376_v4 = vpop.xlane.xlu0 %3375 }
0x109b   : > { %v3378_v9 = vmul.f32 0.03125, %v3376_v4  ;;  %v3381_v34 = vmul.f32 %v3379_v2, %v3379_v2 }
0x109d   : > { %v3380_v13 = vsub.f32 %v3363_v12, %v3378_v9  ;;  %v3383_v15 = vsel %vm576_vm2, %v3381_v34, 0.0 }
0x109e   : > { %3384 = vadd.xlane.f32.xlu1 %v3383_v15 }
0x109f   : > { %v3382_v16 = vmul.f32 %v3380_v13, %v3380_v13 }
0x10a1   : > { %v3386_v18 = vsel %vm576_vm2, %v3382_v16, 0.0 }
0x10a2   : > { %3387 = vadd.xlane.f32.xlu1 %v3386_v18 }
0x1127   : > { %v3385_v46 = vpop.xlane.xlu1 %3384 }
0x1128   : > { %v3389_v3 = vmul.f32 0.03125, %v3385_v46 }
0x112a   : > { %v3391_v59 = vadd.f32 1e-05, %v3389_v3 }
0x112b   : > { %v3388_v6 = vpop.xlane.xlu1 %3387 }
0x112c   : > { %4048 = vrsqrt.f32 %v3391_v59  ;;  %v3390_v17 = vmul.f32 0.03125, %v3388_v6 }
0x112e   : > { %v3392_v62 = vadd.f32 1e-05, %v3390_v17 }
0x1130   : > { %4050 = vrsqrt.f32 %v3392_v62 }
0x1139   : > { %v4049_v24 = vpop.eup %4048 }
0x113a   : > { %v3395_v25 = vmul.f32 %v4049_v24, %v3379_v2 }
0x113c   : > { %v3401_v29 = vmul.f32 %v3400_v40, %v3395_v25 }
0x113d   : > { %v4051_v30 = vpop.eup %4050 }
0x113e   : > { %v3407_v32 = vadd.f32 %v3406_v26, %v3401_v29  ;;  %v3396_v11 = vmul.f32 %v4051_v30, %v3380_v13 }
0x1140   : > { %3409 = vst.msk [vmem:[#allocation12] sm:$0xff] %vm576_vm2, %v3407_v32  ;;  %v3402_v42 = vmul.f32 %v3400_v40, %v3396_v11 }
0x1142   : > { %v3408_v5 = vadd.f32 %v3406_v26, %v3402_v42 }
0x1144   : > { %3410 = vst.msk [vmem:[#allocation12 + $0x8] sm:$0xff] %vm576_vm2, %v3408_v5 }
0x1145 PF: > { %p3911_p10 = scmp.eq.s32.totalorder %s4414_s15, 1  ;;  %s4333_s25 = smov [#allocation12]  }
0x1146   : > { %s3420_s3 = sshll.u32 %s4333_s25, 4  ;;  %s3421_s3 = int_to_ptr.vmem [resolvable:$true] %s3420_s3 }
0x1147   : > { %s4216_s29 = scalar_lea.vmem %s3421_s3, 256  ;;  %p4223_p5 = scmp.lt.s32.totalorder %s3421_s3, %s3421_s3 }
0x1148   : > { %p4217_p0 = scmp.ne.s32.totalorder %s3421_s3, %s4216_s29  ;;  %p4224_p7 = scmp.lt.s32.totalorder %s4216_s29, %s4216_s29 }
0x114a   : > { %p4218_p11 = pnand %p4217_p0, %p3911_p10  ;;  %p4225_p9 = por %p4224_p7, %p4223_p5 }
0x114c   : > { %p4219_p2 = pneg %p4218_p11 }
0x114e   : > { %p4226_p4 = pnand %p4225_p9, %p4219_p2 }
0x1150   : > { %4229 = shalt.err (!%p4226_p4)
}
0x1151   : > { %s4334_s28 = smov 128   ;;  %s5100_s16 = sld [smem:[#allocation25_spill]] }
0x1157   : > { %3883 = dma.vmem_to_hbm [thread:$0]  (%p3911_p10), %s3421_s3, 256, %s5100_s16, [#allocation5], %s4334_s28, %s4334_s28, %s4329_s5  }
0x1158   : > { %4277 = dma.done.wait (%p3911_p10), [#allocation5], 256  }
0x1159   : > { %4279 = vsyncadd (%p3911_p10), [#allocation5], 4294967040 }
0x115a PF: > { %s5101_s21 = sld [smem:[#allocation18_spill]]  ;;  %s5105_s30 = smov %s4286_s10 }
0x115b   : > { %s5102_s26 = sld [smem:[#allocation17_spill]]  ;;  %s5107_s12 = smov %s4298_s13 }
0x115c   : > { %s5103_s11 = sld [smem:[#allocation20_spill]] }
0x115d   : > { %s5104_s9 = sld [smem:[#allocation19_spill]] }
0x1160   : > { %s22_s14 = sadd.s32 1, %s5101_s21  }
0x1161   : > { %p19_p3 = scmp.ge.s32.totalorder %s22_s14, 4   ;;  %s5106_s10 = smov %s5102_s26 }
0x1163   : > { %s5108_s13 = smov %s5104_s9  ;;  %21 = sbr.rel (!%p19_p3) target bundleno = 11 (0xb), region = 150 }
0x1168   :  { %3436 = vsyncpa [#allocation4], 1 }
0x1169   :  { %3438 = vsyncpa [#allocation4 + $0x1], 1 }
0x116a   :  { %3439 = vsyncpa [#allocation7], 1 }
0x116b   :  { %3440 = vsyncpa [#allocation5], 1 }
0x116c   :  { %3442 = vsyncpa [#allocation5 + $0x1], 1 }

</bundles_post_ra>
